<compile_context>
chip_gen: v5e
topology: v5e:2x2
jax: 0.10.0
libtpu: 0.0.40
codegen_flags: <defaults>
</compile_context>

<pallas_src>
from math import ceil

import jax
import jax.numpy as jnp
from jax import lax
from jax.experimental import pallas as pl
from jax.experimental.pallas import tpu as pltpu


# -----------------------------------------------------------------------------
# In-kernel helpers
# -----------------------------------------------------------------------------
def _dense(a, w):
    """(Bt, n, f) @ (f, h): flatten the graph/node axes so the MXU sees Bt*n rows."""
    b, n, f = a.shape
    out = jnp.dot(a.reshape(b * n, f), w, preferred_element_type=jnp.float32)
    return out.reshape(b, n, w.shape[-1])


def _diffpool_levels(x, adj_data, mask, levels, out_ref):
    """Fused DiffPool level chain for Bt graphs.

    x:        (Bt, N, Fin+1) f32, trailing column is ones (degree fold).
    adj_data: (Bt, N, N)     bf16, zero diagonal (wrapper-enforced).
    mask:     (Bt, N, 1)     f32 node mask (level 1 only).
    """
    means = []
    adj_raw = adj_data            # adjacency as dense_diff_pool sees it at this level
    for l, lp in enumerate(levels):
        is_first = (l == 0)
        embed_only = "wjk1_s" not in lp      # last level: pool block output is dead
        bt, n = x.shape[0], x.shape[1]

        # ---- shared SAGE aggregation operator for this level ------------------
        if is_first:
            # Zero-diag data adjacency: add_loop folded as "+ x"; degree row-sum
            # folded into the MXU via the ones column of x (last col of raw0).
            raw0 = jnp.einsum("bij,bjf->bif", adj_raw, x.astype(adj_raw.dtype),
                              preferred_element_type=jnp.float32)
            deg = jnp.maximum(raw0[..., -1:] + 1.0, 1.0)
            inv_deg = pl.reciprocal(deg, approx=True)        # EUP slot, VALU-free
            agg0 = (raw0 + x) * inv_deg
            adj_sl = None
        else:
            # Pooled adjacency: overwrite diagonal with 1 (add_loop) on tiny CxC.
            r = lax.broadcasted_iota(jnp.int32, (bt, n, n), 1)
            c = lax.broadcasted_iota(jnp.int32, (bt, n, n), 2)
            adj_sl = jnp.where(r == c, 1.0, adj_raw)
            deg = jnp.maximum(jnp.sum(adj_sl, axis=-1, keepdims=True), 1.0)
            inv_deg = pl.reciprocal(deg, approx=True)
            agg0 = jnp.einsum("bij,bjf->bif", adj_sl, x,
                              preferred_element_type=jnp.float32) * inv_deg

        # ---- SAGE layer 1 (pool | embed share one matmul via folded weights) --
        h1 = _dense(agg0, lp["w1_rel"]) + _dense(x, lp["w1_root"]) + lp["b1"]
        if is_first:
            h1 = h1 * mask
        h1 = jnp.maximum(h1, 0.0)

        # ---- SAGE layer 2 (block-diagonal weights) -----------------------------
        if is_first:
            raw1 = jnp.einsum("bij,bjf->bif", adj_raw, h1.astype(adj_raw.dtype),
                              preferred_element_type=jnp.float32)
            agg1 = (raw1 + h1) * inv_deg
        else:
            agg1 = jnp.einsum("bij,bjf->bif", adj_sl, h1,
                              preferred_element_type=jnp.float32) * inv_deg
        h2 = _dense(agg1, lp["w2_rel"]) + _dense(h1, lp["w2_root"]) + lp["b2"]
        if is_first:
            h2 = h2 * mask
        h2 = jnp.maximum(h2, 0.0)

        # ---- JumpingKnowledge('cat') + Linear -> embed features ----------------
        xe = _dense(h1, lp["wjk1_e"]) + _dense(h2, lp["wjk2_e"]) + lp["bjk_e"]
        xe = jnp.maximum(xe, 0.0)                          # outer F.relu(embed(...))
        means.append(jnp.sum(xe, axis=1, keepdims=True) * (1.0 / n))   # torch mean(dim=1)

        if embed_only:
            # TODO(synk): the torch reference also evaluates pool_blocks[-1] here
            # but its output is never consumed (no diff_pool after it) -> skipped.
            break

        # ---- dense_diff_pool: softmax(s), x' = s^T x, adj' = s^T A s -----------
        s = _dense(h1, lp["wjk1_s"]) + _dense(h2, lp["wjk2_s"]) + lp["bjk_s"]
        s = s - jnp.max(s, axis=-1, keepdims=True)
        e = jnp.exp(s)
        s = e / jnp.sum(e, axis=-1, keepdims=True)
        if is_first:
            sm, xm = s * mask, xe * mask
        else:
            sm, xm = s, xe

        dn = (((0,), (0,)), ((), ()))                      # contract over the node axis
        xp, ap = [], []
        for b in range(bt):                                # Bt is small; unrolled
            smb = sm[b]                                    # (n, C)
            xp.append(lax.dot_general(smb, xm[b], dn,
                                      preferred_element_type=jnp.float32))
            u = jnp.dot(adj_raw[b], smb.astype(adj_raw.dtype),
                        preferred_element_type=jnp.float32)          # (n, C)
            ap.append(lax.dot_general(smb, u, dn,
                                      preferred_element_type=jnp.float32))
        x = jnp.stack(xp)                                  # (Bt, C, He)  stays in VMEM
        adj_raw = jnp.stack(ap)                            # (Bt, C, C)   stays in VMEM
        # TODO(synk): dense_diff_pool's link_loss / ent_loss are discarded by the
        # torch forward pass, so they are not computed here.

    out_ref[...] = jnp.concatenate(means, axis=-1)         # (Bt, 1, n_levels*hidden)


# -----------------------------------------------------------------------------
# Fused backbone: one pallas_call for all levels
# -----------------------------------------------------------------------------
def _pick_graphs_per_step(batch, max_graphs=4):
    """Batch graphs per grid step, but keep >= 2 grid steps (v7x has 2 TCs)."""
    if batch <= 1:
        return 1
    target = min(max_graphs, max(batch // 2, 1))
    for bt in range(target, 0, -1):
        if batch % bt == 0:
            return bt
    return 1


def diffpool_backbone(x_aug, adj_bf16, mask3, levels, graphs_per_step):
    B, N, _ = x_aug.shape
    bt = graphs_per_step
    assert B % bt == 0, "batch must be divisible by graphs_per_step"
    k_out = sum(lp["bjk_e"].shape[1] for lp in levels)     # n_levels * hidden

    leaves, treedef = jax.tree_util.tree_flatten(levels)   # folded weights, prepped once

    def kernel(*refs):
        x_ref, adj_ref, mask_ref = refs[:3]
        out_ref = refs[-1]
        lvl_params = jax.tree_util.tree_unflatten(treedef, [r[...] for r in refs[3:-1]])
        _diffpool_levels(x_ref[...], adj_ref[...], mask_ref[...], lvl_params, out_ref)

    in_specs = (
        [pl.BlockSpec((bt,) + x_aug.shape[1:], lambda g: (g, 0, 0)),
         pl.BlockSpec((bt,) + adj_bf16.shape[1:], lambda g: (g, 0, 0)),
         pl.BlockSpec((bt,) + mask3.shape[1:], lambda g: (g, 0, 0))]
        + [pl.BlockSpec(p.shape, lambda g, _nd=p.ndim: (0,) * _nd) for p in leaves])

    out = pl.pallas_call(
        kernel,
        out_shape=jax.ShapeDtypeStruct((B, 1, k_out), jnp.float32),
        grid=(B // bt,),
        in_specs=in_specs,
        out_specs=pl.BlockSpec((bt, 1, k_out), lambda g: (g, 0, 0)),
        compiler_params=pltpu.CompilerParams(
            dimension_semantics=("parallel",),
            vmem_limit_bytes=32 * 1024 * 1024),
    )(x_aug, adj_bf16, mask3, *leaves)
    return out[:, 0, :]


# -----------------------------------------------------------------------------
# Parameter construction + one-time wrapper-side weight folding
# -----------------------------------------------------------------------------
def _lin_w(key, fan_in, fan_out):
    return jax.random.normal(key, (fan_in, fan_out), jnp.float32) / jnp.sqrt(float(fan_in))


def init_block_params(key, c_in, c_hid, c_out):
    ks = jax.random.split(key, 9)
    return {
        "wrel1": _lin_w(ks[0], c_in, c_hid),
        "wroot1": _lin_w(ks[1], c_in, c_hid),
        "brel1": jax.random.normal(ks[2], (1, c_hid), jnp.float32) * 0.01,
        "wrel2": _lin_w(ks[3], c_hid, c_out),
        "wroot2": _lin_w(ks[4], c_hid, c_out),
        "brel2": jax.random.normal(ks[5], (1, c_out), jnp.float32) * 0.01,
        "wlin1": _lin_w(ks[6], c_hid, c_out),   # Linear(hid+out, out) columns acting on x1
        "wlin2": _lin_w(ks[7], c_out, c_out),   # columns acting on x2
        "blin": jax.random.normal(ks[8], (1, c_out), jnp.float32) * 0.01,
    }


def init_diffpool_params(key, num_features, num_classes, hidden, num_pools, num_nodes, ratio=0.25):
    ks = jax.random.split(key, 4 + 2 * max(num_pools - 1, 0))
    n = ceil(ratio * num_nodes)
    params = {
        "embed_block1": init_block_params(ks[0], num_features, hidden, hidden),
        "pool_block1": init_block_params(ks[1], num_features, hidden, n),
        "embed_blocks": [],
        "pool_blocks": [],
    }
    kidx = 4
    for _ in range(num_pools - 1):
        n = ceil(ratio * n)
        params["embed_blocks"].append(init_block_params(ks[kidx], hidden, hidden, hidden))
        params["pool_blocks"].append(init_block_params(ks[kidx + 1], hidden, hidden, n))
        kidx += 2
    jk_width = (len(params["embed_blocks"]) + 1) * hidden
    params["lin1_w"] = _lin_w(ks[2], jk_width, hidden)
    params["lin1_b"] = jnp.zeros((1, hidden), jnp.float32)
    params["lin2_w"] = _lin_w(ks[3], hidden, num_classes)
    params["lin2_b"] = jnp.zeros((1, num_classes), jnp.float32)
    return params


def _blockdiag(a, b):
    return jnp.block([[a, jnp.zeros((a.shape[0], b.shape[1]), jnp.float32)],
                      [jnp.zeros((b.shape[0], a.shape[1]), jnp.float32), b]])


def _pad_zero_row(w):
    # Extra zero input row for the degree-fold ones column of x_aug.
    return jnp.concatenate([w, jnp.zeros((1, w.shape[1]), w.dtype)], axis=0)


def prepare_full_level(pool_p, embed_p, fold_deg):
    """Fold pool/embed block weights so one fused level uses half the matmuls."""
    hp, he = pool_p["wrel1"].shape[1], embed_p["wrel1"].shape[1]
    cp, ce = pool_p["wrel2"].shape[1], embed_p["wrel2"].shape[1]
    w1_rel = jnp.concatenate([pool_p["wrel1"], embed_p["wrel1"]], axis=1)
    w1_root = jnp.concatenate([pool_p["wroot1"], embed_p["wroot1"]], axis=1)
    if fold_deg:
        w1_rel, w1_root = _pad_zero_row(w1_rel), _pad_zero_row(w1_root)
    return {
        "w1_rel": w1_rel, "w1_root": w1_root,
        "b1": jnp.concatenate([pool_p["brel1"], embed_p["brel1"]], axis=1),
        "w2_rel": _blockdiag(pool_p["wrel2"], embed_p["wrel2"]),
        "w2_root": _blockdiag(pool_p["wroot2"], embed_p["wroot2"]),
        "b2": jnp.concatenate([pool_p["brel2"], embed_p["brel2"]], axis=1),
        "wjk1_s": jnp.concatenate([pool_p["wlin1"], jnp.zeros((he, cp), jnp.float32)], axis=0),
        "wjk2_s": jnp.concatenate([pool_p["wlin2"], jnp.zeros((ce, cp), jnp.float32)], axis=0),
        "bjk_s": pool_p["blin"],
        "wjk1_e": jnp.concatenate([jnp.zeros((hp, ce), jnp.float32), embed_p["wlin1"]], axis=0),
        "wjk2_e": jnp.concatenate([jnp.zeros((cp, ce), jnp.float32), embed_p["wlin2"]], axis=0),
        "bjk_e": embed_p["blin"],
    }


def prepare_embed_level(embed_p, fold_deg):
    w1_rel, w1_root = embed_p["wrel1"], embed_p["wroot1"]
    if fold_deg:
        w1_rel, w1_root = _pad_zero_row(w1_rel), _pad_zero_row(w1_root)
    return {
        "w1_rel": w1_rel, "w1_root": w1_root, "b1": embed_p["brel1"],
        "w2_rel": embed_p["wrel2"], "w2_root": embed_p["wroot2"], "b2": embed_p["brel2"],
        "wjk1_e": embed_p["wlin1"], "wjk2_e": embed_p["wlin2"], "bjk_e": embed_p["blin"],
    }


def prepare_params(params):
    """One-time weight folding (done outside the jitted forward)."""
    n_levels = len(params["embed_blocks"]) + 1
    levels = []
    if n_levels == 1:
        levels.append(prepare_embed_level(params["embed_block1"], fold_deg=True))
    else:
        levels.append(prepare_full_level(params["pool_block1"], params["embed_block1"],
                                         fold_deg=True))
        for i in range(n_levels - 1):
            if i == n_levels - 2:
                levels.append(prepare_embed_level(params["embed_blocks"][i], fold_deg=False))
            else:
                levels.append(prepare_full_level(params["pool_blocks"][i],
                                                 params["embed_blocks"][i], fold_deg=False))
    return {"levels": levels,
            "lin1_w": params["lin1_w"], "lin1_b": params["lin1_b"],
            "lin2_w": params["lin2_w"], "lin2_b": params["lin2_b"]}


# -----------------------------------------------------------------------------
# Model driver
# -----------------------------------------------------------------------------
def diffpool_forward(prepared, x, adj, mask, graphs_per_step=None):
    B, N, _ = x.shape
    if graphs_per_step is None:
        graphs_per_step = _pick_graphs_per_step(B)

    # The kernel folds add_loop as "+ x": enforce a zero diagonal here so the
    # overwrite semantics of DenseSAGEConv(add_loop=True) are exact.
    # TODO(synk): if the data adjacency carries self loops, dense_diff_pool's
    # s^T A s term should include the original diagonal; assumed absent (typical
    # for dense 0/1 graph datasets).
    adj_zd = adj * (1.0 - jnp.eye(N, dtype=adj.dtype))
    # bf16 stream is exact for a 0/1 adjacency and halves the dominant HBM read.
    adj_bf16 = adj_zd.astype(jnp.bfloat16)
    # Degree-fold: ones column so adj @ [x | 1] yields rowsum(adj) on the MXU.
    x_aug = jnp.concatenate([x, jnp.ones((B, N, 1), x.dtype)], axis=-1)
    mask3 = mask if mask.ndim == 3 else mask[:, :, None]

    feats = diffpool_backbone(x_aug, adj_bf16, mask3, prepared["levels"], graphs_per_step)

    # Tiny readout head (JK-cat already done in-kernel) in plain JAX.
    h = jnp.maximum(feats @ prepared["lin1_w"] + prepared["lin1_b"], 0.0)
    # F.dropout(p=0.5) is the identity in eval mode.
    # TODO(synk): training-mode dropout (random mask + 2x rescale) not implemented.
    logits = h @ prepared["lin2_w"] + prepared["lin2_b"]
    return jax.nn.log_softmax(logits, axis=-1)


if __name__ == "__main__":
    key = jax.random.PRNGKey(0)
    B, N, FEAT, HIDDEN, NUM_CLASSES = 4, 32, 8, 16, 4
    NUM_POOLS, RATIO = 2, 0.25

    k_params, k_x, k_adj = jax.random.split(key, 3)
    params = init_diffpool_params(k_params, FEAT, NUM_CLASSES, HIDDEN,
                                  NUM_POOLS, N, RATIO)
    prepared = prepare_params(params)        # weight folding done once, outside jit

    # deterministic synthetic dense-graph batch
    x = jax.random.normal(k_x, (B, N, FEAT), jnp.float32)
    a = (jax.random.uniform(k_adj, (B, N, N)) < 0.3).astype(jnp.float32)
    adj = jnp.maximum(a, jnp.swapaxes(a, 1, 2))            # symmetric 0/1 adjacency
    adj = adj * (1.0 - jnp.eye(N, dtype=jnp.float32))      # no self loops in data
    num_valid = jnp.array([N, N - 8, N, N - 16])           # some graphs padded
    mask = (jnp.arange(N)[None, :] < num_valid[:, None]).astype(jnp.float32)  # (B, N)
    mask3 = mask[:, :, None]
    adj = adj * mask3 * mask[:, None, :]                   # zero padded rows/cols

    fwd = jax.jit(diffpool_forward)
    log_probs = jax.block_until_ready(fwd(prepared, x, adj, mask3))

    assert log_probs.shape == (B, NUM_CLASSES)
    assert bool(jnp.all(jnp.isfinite(log_probs)))
    row_sums = jnp.sum(jnp.exp(log_probs), axis=-1)        # log_softmax rows sum to 1
    assert bool(jnp.all(jnp.abs(row_sums - 1.0) < 1e-4))
    print("KERNEL_OK")
</pallas_src>

<mosaic_0001>
module attributes {stable_mosaic.version = 11 : i64} {
  func.func @kernel(%arg0: i32, %arg1: memref<2x32x9xf32, #tpu.memory_space<vmem>>, %arg2: memref<2x32x32xbf16, #tpu.memory_space<vmem>>, %arg3: memref<2x32x1xf32, #tpu.memory_space<vmem>>, %arg4: memref<1x32xf32, #tpu.memory_space<vmem>>, %arg5: memref<1x24xf32, #tpu.memory_space<vmem>>, %arg6: memref<1x16xf32, #tpu.memory_space<vmem>>, %arg7: memref<1x8xf32, #tpu.memory_space<vmem>>, %arg8: memref<9x32xf32, #tpu.memory_space<vmem>>, %arg9: memref<9x32xf32, #tpu.memory_space<vmem>>, %arg10: memref<32x24xf32, #tpu.memory_space<vmem>>, %arg11: memref<32x24xf32, #tpu.memory_space<vmem>>, %arg12: memref<32x16xf32, #tpu.memory_space<vmem>>, %arg13: memref<32x8xf32, #tpu.memory_space<vmem>>, %arg14: memref<24x16xf32, #tpu.memory_space<vmem>>, %arg15: memref<24x8xf32, #tpu.memory_space<vmem>>, %arg16: memref<1x16xf32, #tpu.memory_space<vmem>>, %arg17: memref<1x16xf32, #tpu.memory_space<vmem>>, %arg18: memref<1x16xf32, #tpu.memory_space<vmem>>, %arg19: memref<16x16xf32, #tpu.memory_space<vmem>>, %arg20: memref<16x16xf32, #tpu.memory_space<vmem>>, %arg21: memref<16x16xf32, #tpu.memory_space<vmem>>, %arg22: memref<16x16xf32, #tpu.memory_space<vmem>>, %arg23: memref<16x16xf32, #tpu.memory_space<vmem>>, %arg24: memref<16x16xf32, #tpu.memory_space<vmem>>, %arg25: memref<2x1x32xf32, #tpu.memory_space<vmem>>) attributes {dimension_semantics = [#tpu.dimension_semantics<parallel>], iteration_bounds = array<i64: 2>, scalar_prefetch = 0 : i64, scratch_operands = 0 : i64, tpu.core_type = #tpu.core_type<tc>, window_params = [{transform_indices = @transform_0, window_bounds = array<i64: 2, 32, 9>}, {transform_indices = @transform_1, window_bounds = array<i64: 2, 32, 32>}, {transform_indices = @transform_2, window_bounds = array<i64: 2, 32, 1>}, {pipeline_mode = #tpu.pipeline_mode<synchronous>, transform_indices = @transform_3, window_bounds = array<i64: 1, 32>}, {pipeline_mode = #tpu.pipeline_mode<synchronous>, transform_indices = @transform_4, window_bounds = array<i64: 1, 24>}, {pipeline_mode = #tpu.pipeline_mode<synchronous>, transform_indices = @transform_5, window_bounds = array<i64: 1, 16>}, {pipeline_mode = #tpu.pipeline_mode<synchronous>, transform_indices = @transform_6, window_bounds = array<i64: 1, 8>}, {pipeline_mode = #tpu.pipeline_mode<synchronous>, transform_indices = @transform_7, window_bounds = array<i64: 9, 32>}, {pipeline_mode = #tpu.pipeline_mode<synchronous>, transform_indices = @transform_8, window_bounds = array<i64: 9, 32>}, {pipeline_mode = #tpu.pipeline_mode<synchronous>, transform_indices = @transform_9, window_bounds = array<i64: 32, 24>}, {pipeline_mode = #tpu.pipeline_mode<synchronous>, transform_indices = @transform_10, window_bounds = array<i64: 32, 24>}, {pipeline_mode = #tpu.pipeline_mode<synchronous>, transform_indices = @transform_11, window_bounds = array<i64: 32, 16>}, {pipeline_mode = #tpu.pipeline_mode<synchronous>, transform_indices = @transform_12, window_bounds = array<i64: 32, 8>}, {pipeline_mode = #tpu.pipeline_mode<synchronous>, transform_indices = @transform_13, window_bounds = array<i64: 24, 16>}, {pipeline_mode = #tpu.pipeline_mode<synchronous>, transform_indices = @transform_14, window_bounds = array<i64: 24, 8>}, {pipeline_mode = #tpu.pipeline_mode<synchronous>, transform_indices = @transform_15, window_bounds = array<i64: 1, 16>}, {pipeline_mode = #tpu.pipeline_mode<synchronous>, transform_indices = @transform_16, window_bounds = array<i64: 1, 16>}, {pipeline_mode = #tpu.pipeline_mode<synchronous>, transform_indices = @transform_17, window_bounds = array<i64: 1, 16>}, {pipeline_mode = #tpu.pipeline_mode<synchronous>, transform_indices = @transform_18, window_bounds = array<i64: 16, 16>}, {pipeline_mode = #tpu.pipeline_mode<synchronous>, transform_indices = @transform_19, window_bounds = array<i64: 16, 16>}, {pipeline_mode = #tpu.pipeline_mode<synchronous>, transform_indices = @transform_20, window_bounds = array<i64: 16, 16>}, {pipeline_mode = #tpu.pipeline_mode<synchronous>, transform_indices = @transform_21, window_bounds = array<i64: 16, 16>}, {pipeline_mode = #tpu.pipeline_mode<synchronous>, transform_indices = @transform_22, window_bounds = array<i64: 16, 16>}, {pipeline_mode = #tpu.pipeline_mode<synchronous>, transform_indices = @transform_23, window_bounds = array<i64: 16, 16>}, {transform_indices = @transform_24, window_bounds = array<i64: 2, 1, 32>}]} {
    %c0 = arith.constant 0 : index
    %c0_0 = arith.constant 0 : index
    %0 = vector.load %arg4[%c0, %c0_0] : memref<1x32xf32, #tpu.memory_space<vmem>>, vector<1x32xf32>
    %c0_1 = arith.constant 0 : index
    %c0_2 = arith.constant 0 : index
    %1 = vector.load %arg5[%c0_1, %c0_2] : memref<1x24xf32, #tpu.memory_space<vmem>>, vector<1x24xf32>
    %c0_3 = arith.constant 0 : index
    %c0_4 = arith.constant 0 : index
    %2 = vector.load %arg6[%c0_3, %c0_4] : memref<1x16xf32, #tpu.memory_space<vmem>>, vector<1x16xf32>
    %c0_5 = arith.constant 0 : index
    %c0_6 = arith.constant 0 : index
    %3 = vector.load %arg7[%c0_5, %c0_6] : memref<1x8xf32, #tpu.memory_space<vmem>>, vector<1x8xf32>
    %c0_7 = arith.constant 0 : index
    %c0_8 = arith.constant 0 : index
    %4 = vector.load %arg8[%c0_7, %c0_8] : memref<9x32xf32, #tpu.memory_space<vmem>>, vector<9x32xf32>
    %c0_9 = arith.constant 0 : index
    %c0_10 = arith.constant 0 : index
    %5 = vector.load %arg9[%c0_9, %c0_10] : memref<9x32xf32, #tpu.memory_space<vmem>>, vector<9x32xf32>
    %c0_11 = arith.constant 0 : index
    %c0_12 = arith.constant 0 : index
    %6 = vector.load %arg10[%c0_11, %c0_12] : memref<32x24xf32, #tpu.memory_space<vmem>>, vector<32x24xf32>
    %c0_13 = arith.constant 0 : index
    %c0_14 = arith.constant 0 : index
    %7 = vector.load %arg11[%c0_13, %c0_14] : memref<32x24xf32, #tpu.memory_space<vmem>>, vector<32x24xf32>
    %c0_15 = arith.constant 0 : index
    %c0_16 = arith.constant 0 : index
    %8 = vector.load %arg12[%c0_15, %c0_16] : memref<32x16xf32, #tpu.memory_space<vmem>>, vector<32x16xf32>
    %c0_17 = arith.constant 0 : index
    %c0_18 = arith.constant 0 : index
    %9 = vector.load %arg13[%c0_17, %c0_18] : memref<32x8xf32, #tpu.memory_space<vmem>>, vector<32x8xf32>
    %c0_19 = arith.constant 0 : index
    %c0_20 = arith.constant 0 : index
    %10 = vector.load %arg14[%c0_19, %c0_20] : memref<24x16xf32, #tpu.memory_space<vmem>>, vector<24x16xf32>
    %c0_21 = arith.constant 0 : index
    %c0_22 = arith.constant 0 : index
    %11 = vector.load %arg15[%c0_21, %c0_22] : memref<24x8xf32, #tpu.memory_space<vmem>>, vector<24x8xf32>
    %c0_23 = arith.constant 0 : index
    %c0_24 = arith.constant 0 : index
    %12 = vector.load %arg16[%c0_23, %c0_24] : memref<1x16xf32, #tpu.memory_space<vmem>>, vector<1x16xf32>
    %c0_25 = arith.constant 0 : index
    %c0_26 = arith.constant 0 : index
    %13 = vector.load %arg17[%c0_25, %c0_26] : memref<1x16xf32, #tpu.memory_space<vmem>>, vector<1x16xf32>
    %c0_27 = arith.constant 0 : index
    %c0_28 = arith.constant 0 : index
    %14 = vector.load %arg18[%c0_27, %c0_28] : memref<1x16xf32, #tpu.memory_space<vmem>>, vector<1x16xf32>
    %c0_29 = arith.constant 0 : index
    %c0_30 = arith.constant 0 : index
    %15 = vector.load %arg19[%c0_29, %c0_30] : memref<16x16xf32, #tpu.memory_space<vmem>>, vector<16x16xf32>
    %c0_31 = arith.constant 0 : index
    %c0_32 = arith.constant 0 : index
    %16 = vector.load %arg20[%c0_31, %c0_32] : memref<16x16xf32, #tpu.memory_space<vmem>>, vector<16x16xf32>
    %c0_33 = arith.constant 0 : index
    %c0_34 = arith.constant 0 : index
    %17 = vector.load %arg21[%c0_33, %c0_34] : memref<16x16xf32, #tpu.memory_space<vmem>>, vector<16x16xf32>
    %c0_35 = arith.constant 0 : index
    %c0_36 = arith.constant 0 : index
    %18 = vector.load %arg22[%c0_35, %c0_36] : memref<16x16xf32, #tpu.memory_space<vmem>>, vector<16x16xf32>
    %c0_37 = arith.constant 0 : index
    %c0_38 = arith.constant 0 : index
    %19 = vector.load %arg23[%c0_37, %c0_38] : memref<16x16xf32, #tpu.memory_space<vmem>>, vector<16x16xf32>
    %c0_39 = arith.constant 0 : index
    %c0_40 = arith.constant 0 : index
    %20 = vector.load %arg24[%c0_39, %c0_40] : memref<16x16xf32, #tpu.memory_space<vmem>>, vector<16x16xf32>
    %c0_41 = arith.constant 0 : index
    %c0_42 = arith.constant 0 : index
    %c0_43 = arith.constant 0 : index
    %21 = vector.load %arg1[%c0_41, %c0_42, %c0_43] : memref<2x32x9xf32, #tpu.memory_space<vmem>>, vector<2x32x9xf32>
    %c0_44 = arith.constant 0 : index
    %c0_45 = arith.constant 0 : index
    %c0_46 = arith.constant 0 : index
    %22 = vector.load %arg2[%c0_44, %c0_45, %c0_46] : memref<2x32x32xbf16, #tpu.memory_space<vmem>>, vector<2x32x32xbf16>
    %c0_47 = arith.constant 0 : index
    %c0_48 = arith.constant 0 : index
    %c0_49 = arith.constant 0 : index
    %23 = vector.load %arg3[%c0_47, %c0_48, %c0_49] : memref<2x32x1xf32, #tpu.memory_space<vmem>>, vector<2x32x1xf32>
    %24 = arith.truncf %21 : vector<2x32x9xf32> to vector<2x32x9xbf16>
    "tpu.trace_start"() <{level = 10 : i32, message = "bij,bjf->bif"}> : () -> ()
    %cst = arith.constant dense<0.000000e+00> : vector<2x32x9xf32>
    %25 = tpu.matmul %22, %24, %cst {dimension_numbers = #tpu.dot_dimension_numbers<[2], [1], [1], [2], [0, 0, 0, 1, 1, 2], [0], [0]>} : vector<2x32x32xbf16>, vector<2x32x9xbf16>, vector<2x32x9xf32> -> vector<2x32x9xf32>
    "tpu.trace_stop"() : () -> ()
    %26 = vector.extract_strided_slice %25 {offsets = [0, 0, 8], sizes = [2, 32, 1], strides = [1, 1, 1]} : vector<2x32x9xf32> to vector<2x32x1xf32>
    %cst_50 = arith.constant 1.000000e+00 : f32
    %27 = vector.broadcast %cst_50 : f32 to vector<2x32x1xf32>
    %28 = arith.addf %26, %27 : vector<2x32x1xf32>
    %cst_51 = arith.constant 1.000000e+00 : f32
    %29 = vector.broadcast %cst_51 : f32 to vector<2x32x1xf32>
    %30 = arith.maximumf %28, %29 : vector<2x32x1xf32>
    %31 = tpu.reciprocal %30 {approx = true} : vector<2x32x1xf32> -> vector<2x32x1xf32>
    %32 = arith.addf %25, %21 : vector<2x32x9xf32>
    %33 = vector.broadcast %31 : vector<2x32x1xf32> to vector<2x32x9xf32>
    %34 = arith.mulf %32, %33 : vector<2x32x9xf32>
    %35 = vector.shape_cast %34 : vector<2x32x9xf32> to vector<64x9xf32>
    %cst_52 = arith.constant dense<0.000000e+00> : vector<64x32xf32>
    %36 = tpu.matmul %35, %4, %cst_52 {dimension_numbers = #tpu.dot_dimension_numbers<[1], [0], [0], [1], [0, 0, 1, 1], [], []>} : vector<64x9xf32>, vector<9x32xf32>, vector<64x32xf32> -> vector<64x32xf32>
    %37 = vector.shape_cast %36 : vector<64x32xf32> to vector<2x32x32xf32>
    %38 = vector.shape_cast %21 : vector<2x32x9xf32> to vector<64x9xf32>
    %cst_53 = arith.constant dense<0.000000e+00> : vector<64x32xf32>
    %39 = tpu.matmul %38, %5, %cst_53 {dimension_numbers = #tpu.dot_dimension_numbers<[1], [0], [0], [1], [0, 0, 1, 1], [], []>} : vector<64x9xf32>, vector<9x32xf32>, vector<64x32xf32> -> vector<64x32xf32>
    %40 = vector.shape_cast %39 : vector<64x32xf32> to vector<2x32x32xf32>
    %41 = arith.addf %37, %40 : vector<2x32x32xf32>
    %42 = vector.shape_cast %0 : vector<1x32xf32> to vector<1x1x32xf32>
    %43 = vector.broadcast %42 : vector<1x1x32xf32> to vector<2x32x32xf32>
    %44 = arith.addf %41, %43 : vector<2x32x32xf32>
    %45 = vector.broadcast %23 : vector<2x32x1xf32> to vector<2x32x32xf32>
    %46 = arith.mulf %44, %45 : vector<2x32x32xf32>
    %cst_54 = arith.constant 0.000000e+00 : f32
    %47 = vector.broadcast %cst_54 : f32 to vector<2x32x32xf32>
    %48 = arith.maximumf %46, %47 : vector<2x32x32xf32>
    %49 = arith.truncf %48 : vector<2x32x32xf32> to vector<2x32x32xbf16>
    "tpu.trace_start"() <{level = 10 : i32, message = "bij,bjf->bif"}> : () -> ()
    %cst_55 = arith.constant dense<0.000000e+00> : vector<2x32x32xf32>
    %50 = tpu.matmul %22, %49, %cst_55 {dimension_numbers = #tpu.dot_dimension_numbers<[2], [1], [1], [2], [0, 0, 0, 1, 1, 2], [0], [0]>} : vector<2x32x32xbf16>, vector<2x32x32xbf16>, vector<2x32x32xf32> -> vector<2x32x32xf32>
    "tpu.trace_stop"() : () -> ()
    %51 = arith.addf %50, %48 : vector<2x32x32xf32>
    %52 = vector.broadcast %31 : vector<2x32x1xf32> to vector<2x32x32xf32>
    %53 = arith.mulf %51, %52 : vector<2x32x32xf32>
    %54 = vector.shape_cast %53 : vector<2x32x32xf32> to vector<64x32xf32>
    %cst_56 = arith.constant dense<0.000000e+00> : vector<64x24xf32>
    %55 = tpu.matmul %54, %6, %cst_56 {dimension_numbers = #tpu.dot_dimension_numbers<[1], [0], [0], [1], [0, 0, 1, 1], [], []>} : vector<64x32xf32>, vector<32x24xf32>, vector<64x24xf32> -> vector<64x24xf32>
    %56 = vector.shape_cast %55 : vector<64x24xf32> to vector<2x32x24xf32>
    %57 = vector.shape_cast %48 : vector<2x32x32xf32> to vector<64x32xf32>
    %cst_57 = arith.constant dense<0.000000e+00> : vector<64x24xf32>
    %58 = tpu.matmul %57, %7, %cst_57 {dimension_numbers = #tpu.dot_dimension_numbers<[1], [0], [0], [1], [0, 0, 1, 1], [], []>} : vector<64x32xf32>, vector<32x24xf32>, vector<64x24xf32> -> vector<64x24xf32>
    %59 = vector.shape_cast %58 : vector<64x24xf32> to vector<2x32x24xf32>
    %60 = arith.addf %56, %59 : vector<2x32x24xf32>
    %61 = vector.shape_cast %1 : vector<1x24xf32> to vector<1x1x24xf32>
    %62 = vector.broadcast %61 : vector<1x1x24xf32> to vector<2x32x24xf32>
    %63 = arith.addf %60, %62 : vector<2x32x24xf32>
    %64 = vector.broadcast %23 : vector<2x32x1xf32> to vector<2x32x24xf32>
    %65 = arith.mulf %63, %64 : vector<2x32x24xf32>
    %cst_58 = arith.constant 0.000000e+00 : f32
    %66 = vector.broadcast %cst_58 : f32 to vector<2x32x24xf32>
    %67 = arith.maximumf %65, %66 : vector<2x32x24xf32>
    %68 = vector.shape_cast %48 : vector<2x32x32xf32> to vector<64x32xf32>
    %cst_59 = arith.constant dense<0.000000e+00> : vector<64x16xf32>
    %69 = tpu.matmul %68, %8, %cst_59 {dimension_numbers = #tpu.dot_dimension_numbers<[1], [0], [0], [1], [0, 0, 1, 1], [], []>} : vector<64x32xf32>, vector<32x16xf32>, vector<64x16xf32> -> vector<64x16xf32>
    %70 = vector.shape_cast %69 : vector<64x16xf32> to vector<2x32x16xf32>
    %71 = vector.shape_cast %67 : vector<2x32x24xf32> to vector<64x24xf32>
    %cst_60 = arith.constant dense<0.000000e+00> : vector<64x16xf32>
    %72 = tpu.matmul %71, %10, %cst_60 {dimension_numbers = #tpu.dot_dimension_numbers<[1], [0], [0], [1], [0, 0, 1, 1], [], []>} : vector<64x24xf32>, vector<24x16xf32>, vector<64x16xf32> -> vector<64x16xf32>
    %73 = vector.shape_cast %72 : vector<64x16xf32> to vector<2x32x16xf32>
    %74 = arith.addf %70, %73 : vector<2x32x16xf32>
    %75 = vector.shape_cast %2 : vector<1x16xf32> to vector<1x1x16xf32>
    %76 = vector.broadcast %75 : vector<1x1x16xf32> to vector<2x32x16xf32>
    %77 = arith.addf %74, %76 : vector<2x32x16xf32>
    %cst_61 = arith.constant 0.000000e+00 : f32
    %78 = vector.broadcast %cst_61 : f32 to vector<2x32x16xf32>
    %79 = arith.maximumf %77, %78 : vector<2x32x16xf32>
    %cst_62 = arith.constant dense<0.000000e+00> : vector<2x16xf32>
    %80 = vector.multi_reduction <add>, %79, %cst_62 [1] : vector<2x32x16xf32> to vector<2x16xf32>
    %81 = vector.shape_cast %80 : vector<2x16xf32> to vector<2x1x16xf32>
    %cst_63 = arith.constant 3.125000e-02 : f32
    %82 = vector.broadcast %cst_63 : f32 to vector<2x1x16xf32>
    %83 = arith.mulf %81, %82 : vector<2x1x16xf32>
    %84 = vector.shape_cast %48 : vector<2x32x32xf32> to vector<64x32xf32>
    %cst_64 = arith.constant dense<0.000000e+00> : vector<64x8xf32>
    %85 = tpu.matmul %84, %9, %cst_64 {dimension_numbers = #tpu.dot_dimension_numbers<[1], [0], [0], [1], [0, 0, 1, 1], [], []>} : vector<64x32xf32>, vector<32x8xf32>, vector<64x8xf32> -> vector<64x8xf32>
    %86 = vector.shape_cast %85 : vector<64x8xf32> to vector<2x32x8xf32>
    %87 = vector.shape_cast %67 : vector<2x32x24xf32> to vector<64x24xf32>
    %cst_65 = arith.constant dense<0.000000e+00> : vector<64x8xf32>
    %88 = tpu.matmul %87, %11, %cst_65 {dimension_numbers = #tpu.dot_dimension_numbers<[1], [0], [0], [1], [0, 0, 1, 1], [], []>} : vector<64x24xf32>, vector<24x8xf32>, vector<64x8xf32> -> vector<64x8xf32>
    %89 = vector.shape_cast %88 : vector<64x8xf32> to vector<2x32x8xf32>
    %90 = arith.addf %86, %89 : vector<2x32x8xf32>
    %91 = vector.shape_cast %3 : vector<1x8xf32> to vector<1x1x8xf32>
    %92 = vector.broadcast %91 : vector<1x1x8xf32> to vector<2x32x8xf32>
    %93 = arith.addf %90, %92 : vector<2x32x8xf32>
    %cst_66 = arith.constant dense<0xFF800000> : vector<2x32xf32>
    %94 = vector.multi_reduction <maximumf>, %93, %cst_66 [2] : vector<2x32x8xf32> to vector<2x32xf32>
    %95 = vector.shape_cast %94 : vector<2x32xf32> to vector<2x32x1xf32>
    %96 = vector.broadcast %95 : vector<2x32x1xf32> to vector<2x32x8xf32>
    %97 = arith.subf %93, %96 : vector<2x32x8xf32>
    %98 = math.exp %97 : vector<2x32x8xf32>
    %cst_67 = arith.constant dense<0.000000e+00> : vector<2x32xf32>
    %99 = vector.multi_reduction <add>, %98, %cst_67 [2] : vector<2x32x8xf32> to vector<2x32xf32>
    %100 = vector.shape_cast %99 : vector<2x32xf32> to vector<2x32x1xf32>
    %101 = vector.broadcast %100 : vector<2x32x1xf32> to vector<2x32x8xf32>
    %102 = arith.divf %98, %101 : vector<2x32x8xf32>
    %103 = vector.broadcast %23 : vector<2x32x1xf32> to vector<2x32x8xf32>
    %104 = arith.mulf %102, %103 : vector<2x32x8xf32>
    %105 = vector.broadcast %23 : vector<2x32x1xf32> to vector<2x32x16xf32>
    %106 = arith.mulf %79, %105 : vector<2x32x16xf32>
    %107 = vector.extract_strided_slice %104 {offsets = [0, 0, 0], sizes = [1, 32, 8], strides = [1, 1, 1]} : vector<2x32x8xf32> to vector<1x32x8xf32>
    %108 = vector.shape_cast %107 : vector<1x32x8xf32> to vector<32x8xf32>
    %109 = vector.extract_strided_slice %106 {offsets = [0, 0, 0], sizes = [1, 32, 16], strides = [1, 1, 1]} : vector<2x32x16xf32> to vector<1x32x16xf32>
    %110 = vector.shape_cast %109 : vector<1x32x16xf32> to vector<32x16xf32>
    %cst_68 = arith.constant dense<0.000000e+00> : vector<8x16xf32>
    %111 = tpu.matmul %108, %110, %cst_68 {dimension_numbers = #tpu.dot_dimension_numbers<[0], [0], [1], [1], [0, 1, 1, 1], [], []>} : vector<32x8xf32>, vector<32x16xf32>, vector<8x16xf32> -> vector<8x16xf32>
    %112 = vector.extract_strided_slice %22 {offsets = [0, 0, 0], sizes = [1, 32, 32], strides = [1, 1, 1]} : vector<2x32x32xbf16> to vector<1x32x32xbf16>
    %113 = vector.shape_cast %112 : vector<1x32x32xbf16> to vector<32x32xbf16>
    %114 = arith.truncf %108 : vector<32x8xf32> to vector<32x8xbf16>
    %cst_69 = arith.constant dense<0.000000e+00> : vector<32x8xf32>
    %115 = tpu.matmul %113, %114, %cst_69 {dimension_numbers = #tpu.dot_dimension_numbers<[1], [0], [0], [1], [0, 0, 1, 1], [], []>} : vector<32x32xbf16>, vector<32x8xbf16>, vector<32x8xf32> -> vector<32x8xf32>
    %cst_70 = arith.constant dense<0.000000e+00> : vector<8x8xf32>
    %116 = tpu.matmul %108, %115, %cst_70 {dimension_numbers = #tpu.dot_dimension_numbers<[0], [0], [1], [1], [0, 1, 1, 1], [], []>} : vector<32x8xf32>, vector<32x8xf32>, vector<8x8xf32> -> vector<8x8xf32>
    %117 = vector.extract_strided_slice %104 {offsets = [1, 0, 0], sizes = [1, 32, 8], strides = [1, 1, 1]} : vector<2x32x8xf32> to vector<1x32x8xf32>
    %118 = vector.shape_cast %117 : vector<1x32x8xf32> to vector<32x8xf32>
    %119 = vector.extract_strided_slice %106 {offsets = [1, 0, 0], sizes = [1, 32, 16], strides = [1, 1, 1]} : vector<2x32x16xf32> to vector<1x32x16xf32>
    %120 = vector.shape_cast %119 : vector<1x32x16xf32> to vector<32x16xf32>
    %cst_71 = arith.constant dense<0.000000e+00> : vector<8x16xf32>
    %121 = tpu.matmul %118, %120, %cst_71 {dimension_numbers = #tpu.dot_dimension_numbers<[0], [0], [1], [1], [0, 1, 1, 1], [], []>} : vector<32x8xf32>, vector<32x16xf32>, vector<8x16xf32> -> vector<8x16xf32>
    %122 = vector.extract_strided_slice %22 {offsets = [1, 0, 0], sizes = [1, 32, 32], strides = [1, 1, 1]} : vector<2x32x32xbf16> to vector<1x32x32xbf16>
    %123 = vector.shape_cast %122 : vector<1x32x32xbf16> to vector<32x32xbf16>
    %124 = arith.truncf %118 : vector<32x8xf32> to vector<32x8xbf16>
    %cst_72 = arith.constant dense<0.000000e+00> : vector<32x8xf32>
    %125 = tpu.matmul %123, %124, %cst_72 {dimension_numbers = #tpu.dot_dimension_numbers<[1], [0], [0], [1], [0, 0, 1, 1], [], []>} : vector<32x32xbf16>, vector<32x8xbf16>, vector<32x8xf32> -> vector<32x8xf32>
    %cst_73 = arith.constant dense<0.000000e+00> : vector<8x8xf32>
    %126 = tpu.matmul %118, %125, %cst_73 {dimension_numbers = #tpu.dot_dimension_numbers<[0], [0], [1], [1], [0, 1, 1, 1], [], []>} : vector<32x8xf32>, vector<32x8xf32>, vector<8x8xf32> -> vector<8x8xf32>
    %127 = vector.shape_cast %111 : vector<8x16xf32> to vector<1x8x16xf32>
    %128 = vector.shape_cast %121 : vector<8x16xf32> to vector<1x8x16xf32>
    %129 = tpu.concatenate %127, %128 in 0 : vector<1x8x16xf32>, vector<1x8x16xf32> -> vector<2x8x16xf32>
    %130 = vector.shape_cast %116 : vector<8x8xf32> to vector<1x8x8xf32>
    %131 = vector.shape_cast %126 : vector<8x8xf32> to vector<1x8x8xf32>
    %132 = tpu.concatenate %130, %131 in 0 : vector<1x8x8xf32>, vector<1x8x8xf32> -> vector<2x8x8xf32>
    %133 = tpu.iota {dimensions = array<i32: 1>} : vector<2x8x8xi32>
    %134 = tpu.iota {dimensions = array<i32: 2>} : vector<2x8x8xi32>
    %135 = arith.cmpi eq, %133, %134 : vector<2x8x8xi32>
    %cst_74 = arith.constant 1.000000e+00 : f32
    %136 = vector.broadcast %cst_74 : f32 to vector<2x8x8xf32>
    %137 = arith.select %135, %136, %132 : vector<2x8x8xi1>, vector<2x8x8xf32>
    %cst_75 = arith.constant dense<0.000000e+00> : vector<2x8xf32>
    %138 = vector.multi_reduction <add>, %137, %cst_75 [2] : vector<2x8x8xf32> to vector<2x8xf32>
    %139 = vector.shape_cast %138 : vector<2x8xf32> to vector<2x8x1xf32>
    %cst_76 = arith.constant 1.000000e+00 : f32
    %140 = vector.broadcast %cst_76 : f32 to vector<2x8x1xf32>
    %141 = arith.maximumf %139, %140 : vector<2x8x1xf32>
    %142 = tpu.reciprocal %141 {approx = true} : vector<2x8x1xf32> -> vector<2x8x1xf32>
    "tpu.trace_start"() <{level = 10 : i32, message = "bij,bjf->bif"}> : () -> ()
    %cst_77 = arith.constant dense<0.000000e+00> : vector<2x8x16xf32>
    %143 = tpu.matmul %137, %129, %cst_77 {dimension_numbers = #tpu.dot_dimension_numbers<[2], [1], [1], [2], [0, 0, 0, 1, 1, 2], [0], [0]>} : vector<2x8x8xf32>, vector<2x8x16xf32>, vector<2x8x16xf32> -> vector<2x8x16xf32>
    "tpu.trace_stop"() : () -> ()
    %144 = vector.broadcast %142 : vector<2x8x1xf32> to vector<2x8x16xf32>
    %145 = arith.mulf %143, %144 : vector<2x8x16xf32>
    %146 = vector.shape_cast %145 : vector<2x8x16xf32> to vector<16x16xf32>
    %cst_78 = arith.constant dense<0.000000e+00> : vector<16x16xf32>
    %147 = tpu.matmul %146, %15, %cst_78 {dimension_numbers = #tpu.dot_dimension_numbers<[1], [0], [0], [1], [0, 0, 1, 1], [], []>} : vector<16x16xf32>, vector<16x16xf32>, vector<16x16xf32> -> vector<16x16xf32>
    %148 = vector.shape_cast %147 : vector<16x16xf32> to vector<2x8x16xf32>
    %149 = vector.shape_cast %129 : vector<2x8x16xf32> to vector<16x16xf32>
    %cst_79 = arith.constant dense<0.000000e+00> : vector<16x16xf32>
    %150 = tpu.matmul %149, %16, %cst_79 {dimension_numbers = #tpu.dot_dimension_numbers<[1], [0], [0], [1], [0, 0, 1, 1], [], []>} : vector<16x16xf32>, vector<16x16xf32>, vector<16x16xf32> -> vector<16x16xf32>
    %151 = vector.shape_cast %150 : vector<16x16xf32> to vector<2x8x16xf32>
    %152 = arith.addf %148, %151 : vector<2x8x16xf32>
    %153 = vector.shape_cast %12 : vector<1x16xf32> to vector<1x1x16xf32>
    %154 = vector.broadcast %153 : vector<1x1x16xf32> to vector<2x8x16xf32>
    %155 = arith.addf %152, %154 : vector<2x8x16xf32>
    %cst_80 = arith.constant 0.000000e+00 : f32
    %156 = vector.broadcast %cst_80 : f32 to vector<2x8x16xf32>
    %157 = arith.maximumf %155, %156 : vector<2x8x16xf32>
    "tpu.trace_start"() <{level = 10 : i32, message = "bij,bjf->bif"}> : () -> ()
    %cst_81 = arith.constant dense<0.000000e+00> : vector<2x8x16xf32>
    %158 = tpu.matmul %137, %157, %cst_81 {dimension_numbers = #tpu.dot_dimension_numbers<[2], [1], [1], [2], [0, 0, 0, 1, 1, 2], [0], [0]>} : vector<2x8x8xf32>, vector<2x8x16xf32>, vector<2x8x16xf32> -> vector<2x8x16xf32>
    "tpu.trace_stop"() : () -> ()
    %159 = vector.broadcast %142 : vector<2x8x1xf32> to vector<2x8x16xf32>
    %160 = arith.mulf %158, %159 : vector<2x8x16xf32>
    %161 = vector.shape_cast %160 : vector<2x8x16xf32> to vector<16x16xf32>
    %cst_82 = arith.constant dense<0.000000e+00> : vector<16x16xf32>
    %162 = tpu.matmul %161, %17, %cst_82 {dimension_numbers = #tpu.dot_dimension_numbers<[1], [0], [0], [1], [0, 0, 1, 1], [], []>} : vector<16x16xf32>, vector<16x16xf32>, vector<16x16xf32> -> vector<16x16xf32>
    %163 = vector.shape_cast %162 : vector<16x16xf32> to vector<2x8x16xf32>
    %164 = vector.shape_cast %157 : vector<2x8x16xf32> to vector<16x16xf32>
    %cst_83 = arith.constant dense<0.000000e+00> : vector<16x16xf32>
    %165 = tpu.matmul %164, %18, %cst_83 {dimension_numbers = #tpu.dot_dimension_numbers<[1], [0], [0], [1], [0, 0, 1, 1], [], []>} : vector<16x16xf32>, vector<16x16xf32>, vector<16x16xf32> -> vector<16x16xf32>
    %166 = vector.shape_cast %165 : vector<16x16xf32> to vector<2x8x16xf32>
    %167 = arith.addf %163, %166 : vector<2x8x16xf32>
    %168 = vector.shape_cast %13 : vector<1x16xf32> to vector<1x1x16xf32>
    %169 = vector.broadcast %168 : vector<1x1x16xf32> to vector<2x8x16xf32>
    %170 = arith.addf %167, %169 : vector<2x8x16xf32>
    %cst_84 = arith.constant 0.000000e+00 : f32
    %171 = vector.broadcast %cst_84 : f32 to vector<2x8x16xf32>
    %172 = arith.maximumf %170, %171 : vector<2x8x16xf32>
    %173 = vector.shape_cast %157 : vector<2x8x16xf32> to vector<16x16xf32>
    %cst_85 = arith.constant dense<0.000000e+00> : vector<16x16xf32>
    %174 = tpu.matmul %173, %19, %cst_85 {dimension_numbers = #tpu.dot_dimension_numbers<[1], [0], [0], [1], [0, 0, 1, 1], [], []>} : vector<16x16xf32>, vector<16x16xf32>, vector<16x16xf32> -> vector<16x16xf32>
    %175 = vector.shape_cast %174 : vector<16x16xf32> to vector<2x8x16xf32>
    %176 = vector.shape_cast %172 : vector<2x8x16xf32> to vector<16x16xf32>
    %cst_86 = arith.constant dense<0.000000e+00> : vector<16x16xf32>
    %177 = tpu.matmul %176, %20, %cst_86 {dimension_numbers = #tpu.dot_dimension_numbers<[1], [0], [0], [1], [0, 0, 1, 1], [], []>} : vector<16x16xf32>, vector<16x16xf32>, vector<16x16xf32> -> vector<16x16xf32>
    %178 = vector.shape_cast %177 : vector<16x16xf32> to vector<2x8x16xf32>
    %179 = arith.addf %175, %178 : vector<2x8x16xf32>
    %180 = vector.shape_cast %14 : vector<1x16xf32> to vector<1x1x16xf32>
    %181 = vector.broadcast %180 : vector<1x1x16xf32> to vector<2x8x16xf32>
    %182 = arith.addf %179, %181 : vector<2x8x16xf32>
    %cst_87 = arith.constant 0.000000e+00 : f32
    %183 = vector.broadcast %cst_87 : f32 to vector<2x8x16xf32>
    %184 = arith.maximumf %182, %183 : vector<2x8x16xf32>
    %cst_88 = arith.constant dense<0.000000e+00> : vector<2x16xf32>
    %185 = vector.multi_reduction <add>, %184, %cst_88 [1] : vector<2x8x16xf32> to vector<2x16xf32>
    %186 = vector.shape_cast %185 : vector<2x16xf32> to vector<2x1x16xf32>
    %cst_89 = arith.constant 1.250000e-01 : f32
    %187 = vector.broadcast %cst_89 : f32 to vector<2x1x16xf32>
    %188 = arith.mulf %186, %187 : vector<2x1x16xf32>
    %189 = tpu.concatenate %83, %188 in 2 : vector<2x1x16xf32>, vector<2x1x16xf32> -> vector<2x1x32xf32>
    %c0_90 = arith.constant 0 : index
    %c0_91 = arith.constant 0 : index
    %c0_92 = arith.constant 0 : index
    %190 = vector.load %arg25[%c0_90, %c0_91, %c0_92] : memref<2x1x32xf32, #tpu.memory_space<vmem>>, vector<2x1x32xf32>
    tpu.vector_store %arg25[%c0_90, %c0_91, %c0_92], %189 {strides = array<i32>} : memref<2x1x32xf32, #tpu.memory_space<vmem>>, vector<2x1x32xf32>,
    return
  }
  func.func @transform_0(%arg0: i32) -> (i32, i32, i32) {
    %c0_i32 = arith.constant 0 : i32
    %c0_i32_0 = arith.constant 0 : i32
    %c0_i32_1 = arith.constant 0 : i32
    return %arg0, %c0_i32, %c0_i32_0 : i32, i32, i32
  }
  func.func @transform_1(%arg0: i32) -> (i32, i32, i32) {
    %c0_i32 = arith.constant 0 : i32
    %c0_i32_0 = arith.constant 0 : i32
    %c0_i32_1 = arith.constant 0 : i32
    return %arg0, %c0_i32, %c0_i32_0 : i32, i32, i32
  }
  func.func @transform_2(%arg0: i32) -> (i32, i32, i32) {
    %c0_i32 = arith.constant 0 : i32
    %c0_i32_0 = arith.constant 0 : i32
    %c0_i32_1 = arith.constant 0 : i32
    return %arg0, %c0_i32, %c0_i32_0 : i32, i32, i32
  }
  func.func @transform_3(%arg0: i32) -> (i32, i32) {
    %c0_i32 = arith.constant 0 : i32
    %c0_i32_0 = arith.constant 0 : i32
    %c0_i32_1 = arith.constant 0 : i32
    return %c0_i32, %c0_i32_0 : i32, i32
  }
  func.func @transform_4(%arg0: i32) -> (i32, i32) {
    %c0_i32 = arith.constant 0 : i32
    %c0_i32_0 = arith.constant 0 : i32
    %c0_i32_1 = arith.constant 0 : i32
    return %c0_i32, %c0_i32_0 : i32, i32
  }
  func.func @transform_5(%arg0: i32) -> (i32, i32) {
    %c0_i32 = arith.constant 0 : i32
    %c0_i32_0 = arith.constant 0 : i32
    %c0_i32_1 = arith.constant 0 : i32
    return %c0_i32, %c0_i32_0 : i32, i32
  }
  func.func @transform_6(%arg0: i32) -> (i32, i32) {
    %c0_i32 = arith.constant 0 : i32
    %c0_i32_0 = arith.constant 0 : i32
    %c0_i32_1 = arith.constant 0 : i32
    return %c0_i32, %c0_i32_0 : i32, i32
  }
  func.func @transform_7(%arg0: i32) -> (i32, i32) {
    %c0_i32 = arith.constant 0 : i32
    %c0_i32_0 = arith.constant 0 : i32
    %c0_i32_1 = arith.constant 0 : i32
    return %c0_i32, %c0_i32_0 : i32, i32
  }
  func.func @transform_8(%arg0: i32) -> (i32, i32) {
    %c0_i32 = arith.constant 0 : i32
    %c0_i32_0 = arith.constant 0 : i32
    %c0_i32_1 = arith.constant 0 : i32
    return %c0_i32, %c0_i32_0 : i32, i32
  }
  func.func @transform_9(%arg0: i32) -> (i32, i32) {
    %c0_i32 = arith.constant 0 : i32
    %c0_i32_0 = arith.constant 0 : i32
    %c0_i32_1 = arith.constant 0 : i32
    return %c0_i32, %c0_i32_0 : i32, i32
  }
  func.func @transform_10(%arg0: i32) -> (i32, i32) {
    %c0_i32 = arith.constant 0 : i32
    %c0_i32_0 = arith.constant 0 : i32
    %c0_i32_1 = arith.constant 0 : i32
    return %c0_i32, %c0_i32_0 : i32, i32
  }
  func.func @transform_11(%arg0: i32) -> (i32, i32) {
    %c0_i32 = arith.constant 0 : i32
    %c0_i32_0 = arith.constant 0 : i32
    %c0_i32_1 = arith.constant 0 : i32
    return %c0_i32, %c0_i32_0 : i32, i32
  }
  func.func @transform_12(%arg0: i32) -> (i32, i32) {
    %c0_i32 = arith.constant 0 : i32
    %c0_i32_0 = arith.constant 0 : i32
    %c0_i32_1 = arith.constant 0 : i32
    return %c0_i32, %c0_i32_0 : i32, i32
  }
  func.func @transform_13(%arg0: i32) -> (i32, i32) {
    %c0_i32 = arith.constant 0 : i32
    %c0_i32_0 = arith.constant 0 : i32
    %c0_i32_1 = arith.constant 0 : i32
    return %c0_i32, %c0_i32_0 : i32, i32
  }
  func.func @transform_14(%arg0: i32) -> (i32, i32) {
    %c0_i32 = arith.constant 0 : i32
    %c0_i32_0 = arith.constant 0 : i32
    %c0_i32_1 = arith.constant 0 : i32
    return %c0_i32, %c0_i32_0 : i32, i32
  }
  func.func @transform_15(%arg0: i32) -> (i32, i32) {
    %c0_i32 = arith.constant 0 : i32
    %c0_i32_0 = arith.constant 0 : i32
    %c0_i32_1 = arith.constant 0 : i32
    return %c0_i32, %c0_i32_0 : i32, i32
  }
  func.func @transform_16(%arg0: i32) -> (i32, i32) {
    %c0_i32 = arith.constant 0 : i32
    %c0_i32_0 = arith.constant 0 : i32
    %c0_i32_1 = arith.constant 0 : i32
    return %c0_i32, %c0_i32_0 : i32, i32
  }
  func.func @transform_17(%arg0: i32) -> (i32, i32) {
    %c0_i32 = arith.constant 0 : i32
    %c0_i32_0 = arith.constant 0 : i32
    %c0_i32_1 = arith.constant 0 : i32
    return %c0_i32, %c0_i32_0 : i32, i32
  }
  func.func @transform_18(%arg0: i32) -> (i32, i32) {
    %c0_i32 = arith.constant 0 : i32
    %c0_i32_0 = arith.constant 0 : i32
    %c0_i32_1 = arith.constant 0 : i32
    return %c0_i32, %c0_i32_0 : i32, i32
  }
  func.func @transform_19(%arg0: i32) -> (i32, i32) {
    %c0_i32 = arith.constant 0 : i32
    %c0_i32_0 = arith.constant 0 : i32
    %c0_i32_1 = arith.constant 0 : i32
    return %c0_i32, %c0_i32_0 : i32, i32
  }
  func.func @transform_20(%arg0: i32) -> (i32, i32) {
    %c0_i32 = arith.constant 0 : i32
    %c0_i32_0 = arith.constant 0 : i32
    %c0_i32_1 = arith.constant 0 : i32
    return %c0_i32, %c0_i32_0 : i32, i32
  }
  func.func @transform_21(%arg0: i32) -> (i32, i32) {
    %c0_i32 = arith.constant 0 : i32
    %c0_i32_0 = arith.constant 0 : i32
    %c0_i32_1 = arith.constant 0 : i32
    return %c0_i32, %c0_i32_0 : i32, i32
  }
  func.func @transform_22(%arg0: i32) -> (i32, i32) {
    %c0_i32 = arith.constant 0 : i32
    %c0_i32_0 = arith.constant 0 : i32
    %c0_i32_1 = arith.constant 0 : i32
    return %c0_i32, %c0_i32_0 : i32, i32
  }
  func.func @transform_23(%arg0: i32) -> (i32, i32) {
    %c0_i32 = arith.constant 0 : i32
    %c0_i32_0 = arith.constant 0 : i32
    %c0_i32_1 = arith.constant 0 : i32
    return %c0_i32, %c0_i32_0 : i32, i32
  }
  func.func @transform_24(%arg0: i32) -> (i32, i32, i32) {
    %c0_i32 = arith.constant 0 : i32
    %c0_i32_0 = arith.constant 0 : i32
    %c0_i32_1 = arith.constant 0 : i32
    return %arg0, %c0_i32, %c0_i32_0 : i32, i32, i32
  }
}

</mosaic_0001>

<bundles_post_ra>
// kernel: diffpool_forward.1
= control target key start
LH: loop header
LB: loop body
LE: loop exit
PB: predicated region body
PF: predicated region fallthrough
CT: control target
= control target key end

     0   :  { %s3644_s0 = inlined_call_operand.vmem [shape: f32[4,32,9], index: 0, kind: input, shape index: {}]   ;;  %s3645_s1 = inlined_call_operand.vmem [shape: bf16[4,32,32], index: 1, kind: input, shape index: {}]   ;;  %s3646_s2 = inlined_call_operand.vmem [shape: f32[4,32,1], index: 2, kind: input, shape index: {}]   ;;  %s3647_s3 = inlined_call_operand.vmem [shape: f32[1,32], index: 3, kind: input, shape index: {}]   ;;  %s3648_s4 = inlined_call_operand.vmem [shape: f32[1,24], index: 4, kind: input, shape index: {}]   ;;  %s3649_s5 = inlined_call_operand.vmem [shape: f32[1,16], index: 5, kind: input, shape index: {}]   ;;  %s3650_s6 = inlined_call_operand.vmem [shape: f32[1,8], index: 6, kind: input, shape index: {}]   ;;  %s3651_s7 = inlined_call_operand.vmem [shape: f32[9,32], index: 7, kind: input, shape index: {}]   ;;  %s3652_s8 = inlined_call_operand.vmem [shape: f32[9,32], index: 8, kind: input, shape index: {}]   ;;  %s3653_s9 = inlined_call_operand.vmem [shape: f32[32,24], index: 9, kind: input, shape index: {}]   ;;  %s3654_s10 = inlined_call_operand.vmem [shape: f32[32,24], index: 10, kind: input, shape index: {}]   ;;  %s3655_s11 = inlined_call_operand.vmem [shape: f32[32,16], index: 11, kind: input, shape index: {}]   ;;  %s3656_s12 = inlined_call_operand.vmem [shape: f32[32,8], index: 12, kind: input, shape index: {}]   ;;  %s3657_s13 = inlined_call_operand.vmem [shape: f32[24,16], index: 13, kind: input, shape index: {}]   ;;  %s3658_s14 = inlined_call_operand.vmem [shape: f32[24,8], index: 14, kind: input, shape index: {}]   ;;  %s3659_s15 = inlined_call_operand.vmem [shape: f32[1,16], index: 15, kind: input, shape index: {}]   ;;  %s3660_s16 = inlined_call_operand.vmem [shape: f32[1,16], index: 16, kind: input, shape index: {}]   ;;  %s3661_s17 = inlined_call_operand.vmem [shape: f32[1,16], index: 17, kind: input, shape index: {}]   ;;  %s3662_s18 = inlined_call_operand.vmem [shape: f32[16,16], index: 18, kind: input, shape index: {}]   ;;  %s3663_s19 = inlined_call_operand.vmem [shape: f32[16,16], index: 19, kind: input, shape index: {}]   ;;  %s3664_s20 = inlined_call_operand.vmem [shape: f32[16,16], index: 20, kind: input, shape index: {}]   ;;  %s3665_s21 = inlined_call_operand.vmem [shape: f32[16,16], index: 21, kind: input, shape index: {}]   ;;  %s3666_s22 = inlined_call_operand.vmem [shape: f32[16,16], index: 22, kind: input, shape index: {}]   ;;  %s3667_s23 = inlined_call_operand.vmem [shape: f32[16,16], index: 23, kind: input, shape index: {}]   ;;  %s3668_s24 = inlined_call_operand.vmem [shape: f32[4,1,32], index: 24, kind: output, shape index: {}]  }
   0x1   :  { %3671 = sst [smem:[#allocation2_spill]] %s3644_s0 }
   0x2   :  { %3672 = sst [smem:[#allocation3_spill]] %s3645_s1 }
   0x3   :  { %3673 = sst [smem:[#allocation4_spill]] %s3646_s2 }
   0x4   :  { %3674 = sst [smem:[#allocation5_spill]] %s3647_s3 }
   0x5   :  { %3675 = sst [smem:[#allocation6_spill]] %s3648_s4 }
   0x6   :  { %3676 = sst [smem:[#allocation7_spill]] %s3649_s5  ;;  %s2926_s5 = smov 0  }
   0x7   :  { %3677 = sst [smem:[#allocation8_spill]] %s3650_s6 }
   0x8   :  { %3678 = sst [smem:[#allocation9_spill]] %s3651_s7 }
   0x9   :  { %3679 = sst [smem:[#allocation10_spill]] %s3652_s8 }
   0xa LB: > { %s2571_s26 = sadd.s32 4294967295, %s2796_s5   ;;  %p2575_p0 = scmp.ge.s32.totalorder %s2796_s5, 1  ;;  %s2796_s5 = sphi %s2926_s5, %s34_s5  }
   0xb   : > { %p688_p1 = scmp.lt.s32.totalorder %s2796_s5, 3 }
   0xd   : > { %p689_p2 = pnand %p2575_p0, %p688_p1 }
   0xe   : > { %s2576_s27 = sshll.u32 (!%p689_p2), %s2571_s26, 1  ;;  %s3680_s29 = sld [smem:[#allocation2_spill]] (!%p689_p2) }
   0xf   : > { %692 = sbr.rel (%p689_p2) target bundleno = 2555 (0x9fb), region = 116  ;;  %p767_p3 = scmp.lt.s32.totalorder (!%p689_p2), %s2576_s27, 3 }
  0x10   : > { %s3681_s25 = sld [smem:[#allocation3_spill]] (!%p689_p2) }
  0x11   : > { %s3682_s26 = sld [smem:[#allocation9_spill]] (!%p689_p2) }
  0x12   : > { %s3684_s1 = sld [smem:[#allocation4_spill]] (!%p689_p2) }
  0x13   : > { %s3688_s3 = sld [smem:[#allocation8_spill]] (!%p689_p2) }
  0x14   : > { %s3698_s27 = smov (!%p767_p3, %s2576_s27), 3  ;;  %vm892_vm0 = vcmask 261120   ;;  %v2798_v32 = vmov 8   ;;  %vm1070_vm1 = vcmask 1040384   ;;  %vm1045_vm2 = vcmask 72704  }
  0x15   : > { %s2702_s28 = sshll.u32 %s3698_s27, 5  ;;  %s2703_s7 = sshll.u32 %s3698_s27, 4  ;;  %2723 = vset.pattern.permute.xlu2 %v2798_v32  ;;  %2721 = vset.pattern.permute.xlu0 %v2798_v32  ;;  %vm1542_vm3 = vcmask 195584   ;;  %vm1765_vm4 = vcmask 64512   ;;  %vm1635_vm5 = vcmask 130048  }
  0x16   : > { %s771_s0 = scalar_lea.vmem %s3680_s29, %s2702_s28  ;;  %s2978_s8 = scalar_lea.vmem %s3681_s25, %s2703_s7  ;;  %2722 = vset.pattern.permute.xlu1 %v2798_v32 }
  0x17   : > { %v2942_v0 = vld [vmem:[%s771_s0 + $0x10] sm:$0xff]  ;;  %v2944_v1 = vld [vmem:[%s771_s0 + $0x18] sm:$0xff]  ;;  %v2956_v7 = vld [vmem:[%s771_s0] sm:$0xff]  ;;  %s3683_s29 = sld [smem:[#allocation10_spill]]  ;;  %s2800_s7 = smov 16  }
  0x18   : > { %v2946_v2 = vld [vmem:[%s771_s0 + $0x30] sm:$0xff]  ;;  %v864_v3 = vpack.c.bf16 %v2942_v0, %v2942_v0  ;;  %v865_v4 = vpack.c.bf16 %v2944_v1, %v2944_v1  ;;  %v2952_v5 = vld [vmem:[%s771_s0 + $0x38] sm:$0xff]  ;;  %v2958_v8 = vld [vmem:[%s771_s0 + $0x8] sm:$0xff]  ;;  %v862_v10 = vpack.c.bf16 %v2956_v7, %v2956_v7  ;;  %s3045_s6 = scalar_lea.vmem %s3684_s1, %s2702_s28  ;;  %s3685_s28 = sld [smem:[#allocation5_spill]] }
  0x19   : > { %v868_v6 = vpack.c.bf16 %v2946_v2, %v2946_v2  ;;  %v869_v9 = vpack.c.bf16 %v2952_v5, %v2952_v5  ;;  %v863_v11 = vpack.c.bf16 %v2958_v8, %v2958_v8  ;;  %v2966_v12 = vld [vmem:[%s771_s0 + $0x20] sm:$0xff]  ;;  %v2968_v13 = vld [vmem:[%s771_s0 + $0x28] sm:$0xff]  ;;  %v2984_v29 = vld [vmem:[%s2978_s8 + $0x10] sm:$0xff]  ;;  %s3687_s0 = sld [smem:[#allocation7_spill]]  ;;  %s790_s25 = scalar_lea.vmem %s3668_s24, %s3698_s27 }
  0x1a   : > { %v886_v14 = vunpack.c.l.b16 %v864_v3  ;;  %v887_v15 = vunpack.c.l.b16 %v865_v4  ;;  %v866_v17 = vpack.c.bf16 %v2966_v12, %v2966_v12  ;;  %v884_v19 = vunpack.c.l.b16 %v862_v10  ;;  %v2981_v28 = vld [vmem:[%s2978_s8] sm:$0xff]  ;;  %v2991_v30 = vld [vmem:[%s2978_s8 + $0x8] sm:$0xff]  ;;  %v2994_v31 = vld [vmem:[%s2978_s8 + $0x18] sm:$0xff] }
  0x1b   : > { %v934_v16 = vunpack.c.l.b16 %v868_v6  ;;  %v935_v18 = vunpack.c.l.b16 %v869_v9  ;;  %v885_v20 = vunpack.c.l.b16 %v863_v11  ;;  %v867_v21 = vpack.c.bf16 %v2968_v13, %v2968_v13  ;;  %v798_v4 = vld [vmem:[%s3682_s26 + $0x8] sm:$0x1]  ;;  %v797_v9 = vld [vmem:[%s3682_s26] sm:$0xff] }
  0x1c   : > { %v889_v22 = vpack.c.b16 %v887_v15, %v886_v14  ;;  %v932_v23 = vunpack.c.l.b16 %v866_v17  ;;  %2606 = vmatpush.msk.msra.mxu2 %vm1070_vm1, %v798_v4  ;;  %v854_v11 = vld [vmem:[%s3045_s6] sm:$0xff]  ;;  %v2799_v14 = vmov 0  }
  0x1d   : > { %v937_v24 = vpack.c.b16 %v935_v18, %v934_v16  ;;  %v933_v25 = vunpack.c.l.b16 %v867_v21  ;;  %v888_v26 = vpack.c.b16 %v885_v20, %v884_v19  ;;  %v800_v6 = vld [vmem:[%s3683_s29 + $0x8] sm:$0x1]  ;;  %v799_v10 = vld [vmem:[%s3683_s29] sm:$0xff]  ;;  %v857_v18 = vld [vmem:[%s3045_s6 + $0x18] sm:$0xff] }
  0x1e   : > { %905 = vmatpush.bf16.msra.mxu0 %v889_v22  ;;  %2615 = vmatpush.msk.msra.mxu3 %vm1070_vm1, %v800_v6  ;;  %v860_v21 = vld [vmem:[%s3045_s6 + $0x30] sm:$0xff] }
  0x1f   : > { %952 = vmatpush.bf16.msra.mxu1 %v937_v24  ;;  %v936_v27 = vpack.c.b16 %v933_v25, %v932_v23  ;;  %1089 = vmatpush.msra.mxu2 %v797_v9  ;;  %v856_v22 = vld [vmem:[%s3045_s6 + $0x10] sm:$0xff]  ;;  %v858_v23 = vld [vmem:[%s3045_s6 + $0x20] sm:$0xff] }
  0x20   : > { %1157 = vmatpush.msra.mxu3 %v799_v10 }
  0x21   : > { %2616 = vmatmul.msk.f32.vlgmr.msra.gmra.mxu3 %vm1045_vm2, %v2956_v7 }
  0x22   : > { %906 = vmatpush.bf16.msra.mxu0 %v888_v26  ;;  %v859_v26 = vld [vmem:[%s3045_s6 + $0x28] sm:$0xff] }
  0x23   : > { %953 = vmatpush.bf16.msra.mxu1 %v936_v27  ;;  %v855_v27 = vld [vmem:[%s3045_s6 + $0x8] sm:$0xff] }
  0x25   : > { %2594 = vmatmul.msk.bf16.vlgmr.msra.gmra.mxu0 %vm892_vm0, %v2981_v28 }
  0x26   : > { %2604 = vmatmul.msk.bf16.vlgmr.msra.gmra.mxu1 %vm892_vm0, %v2984_v29 }
  0x29   : > { %2617 = vmatmul.msk.f32.gmra.mxu3 %vm1045_vm2, %v2958_v8 }
  0x31   : > { %2618 = vmatmul.msk.f32.gmra.mxu3 %vm1045_vm2, %v2942_v0 }
  0x35   : > { %2595 = vmatmul.msk.bf16.gmra.mxu0 %vm892_vm0, %v2991_v30 }
  0x36   : > { %2605 = vmatmul.msk.bf16.gmra.mxu1 %vm892_vm0, %v2994_v31 }
  0x39   : > { %2619 = vmatmul.msk.f32.gmra.mxu3 %vm1045_vm2, %v2944_v1 }
  0x41   : > { %2620 = vmatmul.msk.f32.gmra.mxu3 %vm1045_vm2, %v2966_v12 }
  0x49   : > { %2621 = vmatmul.msk.f32.gmra.mxu3 %vm1045_vm2, %v2968_v13 }
  0x51   : > { %2622 = vmatmul.msk.f32.gmra.mxu3 %vm1045_vm2, %v2946_v2 }
  0x59   : > { %2623 = vmatmul.msk.f32.gmra.mxu3 %vm1045_vm2, %v2952_v5 }
  0xa2   : > { %v3000_v33 = vpop.f32.mrf.mxu0 }
  0xa3   : > { %v965_v34 = vadd.f32 1.0, %v3000_v33  ;;  %v3003_v35 = vpop.f32.mrf.mxu1  ;;  %v989_v15 = vadd.f32 %v3000_v33, %v2956_v7 }
  0xa4   : > { %v969_v36 = vadd.f32 1.0, %v3003_v35 }
  0xa5   : > { %v973_v37 = vmax.f32 %v965_v34, 1.0  ;;  %v861_v34 = vld [vmem:[%s3045_s6 + $0x38] sm:$0xff]  ;;  %s3686_s6 = sld [smem:[#allocation6_spill]] }
  0xa6   : > { %v977_v38 = vmax.f32 %v969_v36, 1.0 }
  0xa7   : > { %2734 = vrcp.f32 %v973_v37  ;;  %v993_v37 = vadd.f32 %v3003_v35, %v2966_v12 }
  0xa8   : > { %2736 = vrcp.f32 %v977_v38 }
  0xaa   : > { %v3006_v39 = vpop.f32.mrf.mxu0 }
  0xab   : > { %v966_v40 = vadd.f32 1.0, %v3006_v39  ;;  %v3009_v41 = vpop.f32.mrf.mxu1  ;;  %v990_v19 = vadd.f32 %v3006_v39, %v2958_v8 }
  0xac   : > { %v970_v42 = vadd.f32 1.0, %v3009_v41 }
  0xad   : > { %v2735_v43 = vpop.eup %2734  ;;  %v974_v44 = vmax.f32 %v966_v40, 1.0 }
  0xae   : > { %v2737_v45 = vpop.eup %2736  ;;  %v978_v46 = vmax.f32 %v970_v42, 1.0  ;;  %999 = vperm.xlu0 %2721, %v2735_v43  }
  0xaf   : > { %2738 = vrcp.f32 %v974_v44  ;;  %1019 = vperm.xlu2 %2723, %v2737_v45   ;;  %v808_v44 = vld [vmem:[%s3654_s10 + $0x18] sm:$0xff]  ;;  %v806_v45 = vld [vmem:[%s3654_s10 + $0x8] sm:$0xff] }
  0xb0   : > { %2740 = vrcp.f32 %v978_v46  ;;  %1437 = vmatpush.msrb.mxu3 %v808_v44  ;;  %v1159_v46 = vpop.f32.mrf.mxu3 }
  0xb2   : > { %v3012_v47 = vpop.f32.mrf.mxu0 }
  0xb3   : > { %v967_v48 = vadd.f32 1.0, %v3012_v47  ;;  %v3015_v49 = vpop.f32.mrf.mxu1  ;;  %v991_v8 = vadd.f32 %v3012_v47, %v2942_v0 }
  0xb4   : > { %v971_v50 = vadd.f32 1.0, %v3015_v49  ;;  %v995_v43 = vadd.f32 %v3015_v49, %v2946_v2  ;;  %v807_v2 = vld [vmem:[%s3654_s10 + $0x10] sm:$0xff] }
  0xb5   : > { %v2739_v51 = vpop.eup %2738  ;;  %v975_v52 = vmax.f32 %v967_v48, 1.0  ;;  %1438 = vmatpush.msrb.mxu3 %v807_v2  ;;  %v3130_v48 = vld [vmem:[%s3685_s28] ss:$0 sm:$0xff] }
  0xb6   : > { %v2741_v53 = vpop.eup %2740  ;;  %v979_v54 = vmax.f32 %v971_v50, 1.0  ;;  %1004 = vperm.xlu0 %2721, %v2739_v51  }
  0xb7   : > { %2742 = vrcp.f32 %v975_v52  ;;  %1024 = vperm.xlu2 %2723, %v2741_v53   ;;  %1439 = vmatpush.msrb.mxu3 %v806_v45  ;;  %v812_v45 = vld [vmem:[%s3655_s11 + $0x18] sm:$0xff] }
  0xb8   : > { %2744 = vrcp.f32 %v979_v54  ;;  %v1162_v47 = vpop.f32.mrf.mxu3 }
  0xba   : > { %v3018_v55 = vpop.f32.mrf.mxu0 }
  0xbb   : > { %v968_v56 = vadd.f32 1.0, %v3018_v55  ;;  %v3021_v57 = vpop.f32.mrf.mxu1  ;;  %v992_v32 = vadd.f32 %v3018_v55, %v2944_v1  ;;  %v994_v1 = vadd.f32 %v3009_v41, %v2968_v13 }
  0xbc   : > { %v972_v60 = vadd.f32 1.0, %v3021_v57  ;;  %v996_v13 = vadd.f32 %v3021_v57, %v2952_v5  ;;  %v805_v5 = vld [vmem:[%s3654_s10] sm:$0xff] }
  0xbd   : > { %v2743_v58 = vpop.eup %2742  ;;  %v976_v59 = vmax.f32 %v968_v56, 1.0  ;;  %1440 = vmatpush.msrb.mxu3 %v805_v5 }
  0xbe   : > { %v2745_v61 = vpop.eup %2744  ;;  %1009 = vperm.xlu1 %2722, %v2743_v58   ;;  %v980_v62 = vmax.f32 %v972_v60, 1.0 }
  0xbf   : > { %2746 = vrcp.f32 %v976_v59  ;;  %1029 = vperm.xlu0 %2721, %v2745_v61   ;;  %2724 = vset.pattern.permute.xlu2 %v2799_v14 }
  0xc0   : > { %2748 = vrcp.f32 %v980_v62  ;;  %1214 = vperm.xlu2 %2724, %v856_v22   ;;  %v1165_v54 = vpop.f32.mrf.mxu3 }
  0xc5   : > { %v2747_v63 = vpop.eup %2746 }
  0xc6   : > { %1014 = vperm.xlu1 %2722, %v2747_v63   ;;  %v2749_v3 = vpop.eup %2748 }
  0xc7   : > { %2725 = vset.pattern.permute.xlu0 %v2799_v14 }
  0xc8   : > { %1219 = vperm.xlu0 %2725, %v857_v18   ;;  %1209 = vperm.xlu2 %2724, %v855_v27   ;;  %v1168_v62 = vpop.f32.mrf.mxu3 }
  0xce   : > { %1034 = vperm.xlu1 %2722, %v2749_v3  }
  0xd0   : > { %1224 = vperm.xlu0 %2725, %v858_v23   ;;  %1239 = vperm.xlu2 %2724, %v861_v34  }
  0xd6   : > { %2726 = vset.pattern.permute.xlu1 %v2799_v14  ;;  %v1171_v14 = vpop.f32.mrf.mxu3 }
  0xd7   : > { %1204 = vperm.xlu1 %2726, %v854_v11  }
  0xde   : > { %v1174_v27 = vpop.f32.mrf.mxu3 }
  0xdf   : > { %1234 = vperm.xlu1 %2726, %v860_v21  }
  0xe7   : > { %1229 = vperm.xlu1 %2726, %v859_v26  }
 0x109   : > { %v3091_v36 = vpop.permute.xlu2 %1019 }
 0x10a   : > { %v1041_v38 = vmul.f32 %v3091_v36, %v993_v37 }
 0x111   : > { %v3099_v39 = vpop.permute.xlu2 %1024 }
 0x112   : > { %v1042_v40 = vmul.f32 %v3099_v39, %v994_v1 }
 0x11a   : > { %v3132_v50 = vpop.permute.xlu2 %1214 }
 0x120   : > { %v3054_v16 = vpop.permute.xlu0 %999 }
 0x121   : > { %v1037_v17 = vmul.f32 %v3054_v16, %v989_v15 }
 0x122   : > { %v3142_v59 = vpop.permute.xlu2 %1209 }
 0x123   : > { %2607 = vmatmul.msk.f32.vlgmr.msra.gmra.mxu2 %vm1045_vm2, %v1037_v17 }
 0x128   : > { %v3063_v20 = vpop.permute.xlu0 %1004 }
 0x129   : > { %v1038_v7 = vmul.f32 %v3063_v20, %v990_v19 }
 0x12b   : > { %2608 = vmatmul.msk.f32.gmra.mxu2 %vm1045_vm2, %v1038_v7 }
 0x130   : > { %v3074_v24 = vpop.permute.xlu1 %1009 }
 0x131   : > { %v1039_v25 = vmul.f32 %v3074_v24, %v991_v8  ;;  %v3103_v42 = vpop.permute.xlu0 %1029 }
 0x132   : > { %v1043_v12 = vmul.f32 %v3103_v42, %v995_v43 }
 0x133   : > { %2609 = vmatmul.msk.f32.gmra.mxu2 %vm1045_vm2, %v1039_v25 }
 0x138   : > { %v3084_v33 = vpop.permute.xlu1 %1014 }
 0x139   : > { %v1040_v0 = vmul.f32 %v3084_v33, %v992_v32 }
 0x13a   : > { %v3156_v17 = vpop.permute.xlu0 %1219 }
 0x13b   : > { %2610 = vmatmul.msk.f32.gmra.mxu2 %vm1045_vm2, %v1040_v0 }
 0x140   : > { %v3109_v35 = vpop.permute.xlu1 %1034 }
 0x141   : > { %v1044_v41 = vmul.f32 %v3109_v35, %v996_v13 }
 0x143   : > { %2611 = vmatmul.msk.f32.gmra.mxu2 %vm1045_vm2, %v1041_v38  ;;  %v3175_v38 = vpop.permute.xlu0 %1224 }
 0x149   : > { %v3134_v52 = vpop.permute.xlu1 %1204 }
 0x14b   : > { %2612 = vmatmul.msk.f32.gmra.mxu2 %vm1045_vm2, %v1042_v40 }
 0x151   : > { %v3170_v26 = vpop.permute.xlu1 %1234 }
 0x153   : > { %2613 = vmatmul.msk.f32.gmra.mxu2 %vm1045_vm2, %v1043_v12 }
 0x15b   : > { %2614 = vmatmul.msk.f32.gmra.mxu2 %vm1045_vm2, %v1044_v41 }
 0x1a6   : > { %v1091_v49 = vpop.f32.mrf.mxu2 }
 0x1a7   : > { %v1183_v51 = vadd.f32 %v1159_v46, %v1091_v49  ;;  %v3186_v46 = vpop.permute.xlu1 %1229  ;;  %v811_v49 = vld [vmem:[%s3655_s11 + $0x10] sm:$0xff] }
 0x1a9   : > { %v1194_v53 = vadd.f32 %v3130_v48, %v1183_v51 }
 0x1ab   : > { %v1242_v55 = vmul.f32 %v3134_v52, %v1194_v53  ;;  %v810_v53 = vld [vmem:[%s3655_s11 + $0x8] sm:$0xff] }
 0x1ad   : > { %v3138_v56 = vmax.f32 %v1242_v55, 0.0 }
 0x1ae   : > { %v1094_v57 = vpop.f32.mrf.mxu2 }
 0x1af   : > { %v1184_v58 = vadd.f32 %v1162_v47, %v1094_v57  ;;  %2636 = vmatmul.msk.f32.vlgmr.msrb.gmra.mxu3 %vm892_vm0, %v3138_v56  ;;  %v1258_v37 = vpack.c.bf16 %v3138_v56, %v3138_v56  ;;  %v1177_v47 = vpop.f32.mrf.mxu3  ;;  %v809_v57 = vld [vmem:[%s3655_s11] sm:$0xff] }
 0x1b1   : > { %v1195_v60 = vadd.f32 %v3130_v48, %v1184_v58  ;;  %v1270_v13 = vunpack.c.l.b16 %v1258_v37 }
 0x1b3   : > { %v1243_v61 = vmul.f32 %v3142_v59, %v1195_v60 }
 0x1b5   : > { %v3146_v63 = vmax.f32 %v1243_v61, 0.0 }
 0x1b6   : > { %v1097_v3 = vpop.f32.mrf.mxu2 }
 0x1b7   : > { %v1185_v4 = vadd.f32 %v1165_v54, %v1097_v3  ;;  %2637 = vmatmul.msk.f32.gmra.mxu3 %vm892_vm0, %v3146_v63  ;;  %v1259_v25 = vpack.c.bf16 %v3146_v63, %v3146_v63  ;;  %v1180_v61 = vpop.f32.mrf.mxu3 }
 0x1b9   : > { %v1196_v6 = vadd.f32 %v3130_v48, %v1185_v4  ;;  %v1271_v43 = vunpack.c.l.b16 %v1259_v25 }
 0x1bb   : > { %v1244_v9 = vmul.f32 %v3132_v50, %v1196_v6  ;;  %v1274_v2 = vpack.c.b16 %v1271_v43, %v1270_v13 }
 0x1bd   : > { %v3152_v10 = vmax.f32 %v1244_v9, 0.0  ;;  %v3211_v9 = vpop.permute.xlu2 %1239 }
 0x1be   : > { %v1100_v11 = vpop.f32.mrf.mxu2 }
 0x1bf   : > { %v1186_v15 = vadd.f32 %v1168_v62, %v1100_v11  ;;  %2638 = vmatmul.msk.f32.gmra.mxu3 %vm892_vm0, %v3152_v10  ;;  %v1260_v21 = vpack.c.bf16 %v3152_v10, %v3152_v10 }
 0x1c1   : > { %v1197_v18 = vadd.f32 %v3130_v48, %v1186_v15  ;;  %v1272_v0 = vunpack.c.l.b16 %v1260_v21 }
 0x1c3   : > { %v1245_v19 = vmul.f32 %v3156_v17, %v1197_v18 }
 0x1c5   : > { %v3160_v7 = vmax.f32 %v1245_v19, 0.0 }
 0x1c6   : > { %v1103_v22 = vpop.f32.mrf.mxu2 }
 0x1c7   : > { %v1187_v23 = vadd.f32 %v1171_v14, %v1103_v22  ;;  %2639 = vmatmul.msk.f32.gmra.mxu3 %vm892_vm0, %v3160_v7  ;;  %v1261_v8 = vpack.c.bf16 %v3160_v7, %v3160_v7 }
 0x1c9   : > { %v1198_v32 = vadd.f32 %v3130_v48, %v1187_v23  ;;  %v1273_v34 = vunpack.c.l.b16 %v1261_v8 }
 0x1cb   : > { %v1246_v1 = vmul.f32 %v3175_v38, %v1198_v32  ;;  %v1275_v40 = vpack.c.b16 %v1273_v34, %v1272_v0  ;;  %v801_v32 = vld [vmem:[%s3653_s9] sm:$0xff] }
 0x1cd   : > { %v3178_v12 = vmax.f32 %v1246_v1, 0.0  ;;  %1284 = vmatpush.bf16.msrb.mxu0 %v1275_v40 }
 0x1ce   : > { %v1106_v41 = vpop.f32.mrf.mxu2 }
 0x1cf   : > { %v1188_v44 = vadd.f32 %v1174_v27, %v1106_v41  ;;  %2640 = vmatmul.msk.f32.gmra.mxu3 %vm892_vm0, %v3178_v12  ;;  %v1262_v22 = vpack.c.bf16 %v3178_v12, %v3178_v12  ;;  %v802_v27 = vld [vmem:[%s3653_s9 + $0x8] sm:$0xff] }
 0x1d1   : > { %v1199_v5 = vadd.f32 %v3130_v48, %v1188_v44  ;;  %1285 = vmatpush.bf16.msrb.mxu0 %v1274_v2  ;;  %v1301_v8 = vunpack.c.l.b16 %v1262_v22 }
 0x1d3   : > { %v1247_v51 = vmul.f32 %v3186_v46, %v1199_v5 }
 0x1d4   : > { %2624 = vmatmul.msk.bf16.vlgmr.msrb.gmra.mxu0 %vm892_vm0, %v2981_v28 }
 0x1d5   : > { %1513 = vmatpush.msra.mxu0 %v812_v45  ;;  %v3197_v54 = vmax.f32 %v1247_v51, 0.0  ;;  %v813_v51 = vld [vmem:[%s3656_s12] sm:$0xff] }
 0x1d6   : > { %v1109_v55 = vpop.f32.mrf.mxu2 }
 0x1d7   : > { %1514 = vmatpush.msra.mxu0 %v811_v49  ;;  %v1189_v58 = vadd.f32 %v1177_v47, %v1109_v55  ;;  %2641 = vmatmul.msk.f32.gmra.mxu3 %vm892_vm0, %v3197_v54  ;;  %v815_v47 = vld [vmem:[%s3656_s12 + $0x10] sm:$0xff] }
 0x1d9   : > { %1515 = vmatpush.msra.mxu0 %v810_v53  ;;  %v1200_v60 = vadd.f32 %v3130_v48, %v1189_v58 }
 0x1db   : > { %1516 = vmatpush.msra.mxu0 %v809_v57  ;;  %v1248_v28 = vmul.f32 %v3170_v26, %v1200_v60 }
 0x1dd   : > { %v3206_v62 = vmax.f32 %v1248_v28, 0.0 }
 0x1de   : > { %v1112_v3 = vpop.f32.mrf.mxu2 }
 0x1df   : > { %v1190_v4 = vadd.f32 %v1180_v61, %v1112_v3  ;;  %2642 = vmatmul.msk.f32.gmra.mxu3 %vm892_vm0, %v3206_v62  ;;  %v1264_v15 = vpack.c.bf16 %v3206_v62, %v3206_v62 }
 0x1e1   : > { %v1201_v6 = vadd.f32 %v3130_v48, %v1190_v4  ;;  %v1263_v48 = vpack.c.bf16 %v3197_v54, %v3197_v54  ;;  %v1303_v19 = vunpack.c.l.b16 %v1264_v15 }
 0x1e3   : > { %v1249_v11 = vmul.f32 %v3211_v9, %v1201_v6  ;;  %v1302_v23 = vunpack.c.l.b16 %v1263_v48 }
 0x1e4   : > { %2625 = vmatmul.msk.bf16.gmra.mxu0 %vm892_vm0, %v2991_v30 }
 0x1e5   : > { %v3216_v14 = vmax.f32 %v1249_v11, 0.0  ;;  %v1305_v25 = vpack.c.b16 %v1302_v23, %v1301_v8 }
 0x1e7   : > { %2643 = vmatmul.msk.f32.gmra.mxu3 %vm892_vm0, %v3216_v14  ;;  %v1265_v18 = vpack.c.bf16 %v3216_v14, %v3216_v14 }
 0x1e9   : > { %v1304_v21 = vunpack.c.l.b16 %v1265_v18 }
 0x1eb   : > { %v1306_v30 = vpack.c.b16 %v1304_v21, %v1303_v19 }
 0x1ed   : > { %1315 = vmatpush.bf16.msrb.mxu1 %v1306_v30 }
 0x1f1   : > { %1316 = vmatpush.bf16.msrb.mxu1 %v1305_v25 }
 0x1f4   : > { %2626 = vmatmul.msk.bf16.vlgmr.msrb.gmra.mxu1 %vm892_vm0, %v2984_v29  ;;  %2644 = vmatmul.msk.f32.vlgmr.msra.gmra.mxu0 %vm892_vm0, %v3138_v56  ;;  %v804_v29 = vld [vmem:[%s3653_s9 + $0x18] sm:$0xff] }
 0x1f5   : > { %1372 = vmatpush.msrb.mxu2 %v804_v29 }
 0x1fc   : > { %2645 = vmatmul.msk.f32.gmra.mxu0 %vm892_vm0, %v3146_v63 }
 0x204   : > { %2627 = vmatmul.msk.bf16.gmra.mxu1 %vm892_vm0, %v2994_v31  ;;  %2646 = vmatmul.msk.f32.gmra.mxu0 %vm892_vm0, %v3152_v10  ;;  %v803_v31 = vld [vmem:[%s3653_s9 + $0x10] sm:$0xff] }
 0x205   : > { %1373 = vmatpush.msrb.mxu2 %v803_v31 }
 0x207   : > { %1374 = vmatpush.msrb.mxu2 %v802_v27 }
 0x209   : > { %1375 = vmatpush.msrb.mxu2 %v801_v32 }
 0x20c   : > { %2647 = vmatmul.msk.f32.gmra.mxu0 %vm892_vm0, %v3160_v7 }
 0x214   : > { %2648 = vmatmul.msk.f32.gmra.mxu0 %vm892_vm0, %v3178_v12 }
 0x21c   : > { %2649 = vmatmul.msk.f32.gmra.mxu0 %vm892_vm0, %v3197_v54 }
 0x224   : > { %2650 = vmatmul.msk.f32.gmra.mxu0 %vm892_vm0, %v3206_v62 }
 0x22c   : > { %2651 = vmatmul.msk.f32.gmra.mxu0 %vm892_vm0, %v3216_v14 }
 0x251   : > { %v1287_v0 = vpop.f32.mrf.mxu0 }
 0x252   : > { %v1288_v34 = vadd.f32 %v1287_v0, %v3138_v56 }
 0x254   : > { %v1328_v37 = vmul.f32 %v1288_v34, %v3054_v16 }
 0x256   : > { %2628 = vmatmul.msk.f32.vlgmr.msrb.gmra.mxu2 %vm892_vm0, %v1328_v37 }
 0x259   : > { %v1289_v1 = vpop.f32.mrf.mxu0 }
 0x25a   : > { %v1290_v40 = vadd.f32 %v1289_v1, %v3146_v63 }
 0x25c   : > { %v1329_v43 = vmul.f32 %v1290_v40, %v3063_v20  ;;  %v816_v20 = vld [vmem:[%s3656_s12 + $0x18] sm:$0xff] }
 0x25d   : > { %1676 = vmatpush.msra.mxu2 %v816_v20 }
 0x25e   : > { %2629 = vmatmul.msk.f32.gmra.mxu2 %vm892_vm0, %v1329_v43 }
 0x25f   : > { %1677 = vmatpush.msra.mxu2 %v815_v47 }
 0x261   : > { %v1292_v13 = vpop.f32.mrf.mxu0 }
 0x262   : > { %v1293_v41 = vadd.f32 %v1292_v13, %v3152_v10 }
 0x264   : > { %v1330_v44 = vmul.f32 %v1293_v41, %v3074_v24  ;;  %v814_v24 = vld [vmem:[%s3656_s12 + $0x8] sm:$0xff] }
 0x265   : > { %1678 = vmatpush.msra.mxu2 %v814_v24 }
 0x266   : > { %2630 = vmatmul.msk.f32.gmra.mxu2 %vm892_vm0, %v1330_v44 }
 0x267   : > { %1679 = vmatpush.msra.mxu2 %v813_v51 }
 0x269   : > { %v1294_v2 = vpop.f32.mrf.mxu0 }
 0x26a   : > { %v1295_v45 = vadd.f32 %v1294_v2, %v3160_v7 }
 0x26c   : > { %v1331_v16 = vmul.f32 %v1295_v45, %v3084_v33 }
 0x26e   : > { %2631 = vmatmul.msk.f32.gmra.mxu2 %vm892_vm0, %v1331_v16 }
 0x271   : > { %v1318_v5 = vpop.f32.mrf.mxu1 }
 0x272   : > { %v1319_v49 = vadd.f32 %v1318_v5, %v3178_v12 }
 0x274   : > { %v1332_v33 = vmul.f32 %v1319_v49, %v3091_v36 }
 0x276   : > { %2632 = vmatmul.msk.f32.gmra.mxu2 %vm892_vm0, %v1332_v33 }
 0x279   : > { %v1320_v53 = vpop.f32.mrf.mxu1 }
 0x27a   : > { %v1321_v55 = vadd.f32 %v1320_v53, %v3197_v54 }
 0x27c   : > { %v1333_v57 = vmul.f32 %v1321_v55, %v3099_v39  ;;  %v819_v39 = vld [vmem:[%s3657_s13 + $0x10] sm:$0xff] }
 0x27d   : > { %1580 = vmatpush.msra.mxu1 %v819_v39 }
 0x27e   : > { %2633 = vmatmul.msk.f32.gmra.mxu2 %vm892_vm0, %v1333_v57 }
 0x281   : > { %v1323_v58 = vpop.f32.mrf.mxu1 }
 0x282   : > { %v1324_v60 = vadd.f32 %v1323_v58, %v3206_v62 }
 0x284   : > { %v1334_v36 = vmul.f32 %v1324_v60, %v3103_v42  ;;  %v822_v42 = vld [vmem:[%s3658_s14 + $0x10] sm:$0xff] }
 0x285   : > { %1718 = vmatpush.msra.mxu3 %v822_v42 }
 0x286   : > { %2634 = vmatmul.msk.f32.gmra.mxu2 %vm892_vm0, %v1334_v36 }
 0x289   : > { %v1325_v28 = vpop.f32.mrf.mxu1 }
 0x28a   : > { %v1326_v61 = vadd.f32 %v1325_v28, %v3216_v14 }
 0x28c   : > { %v1335_v3 = vmul.f32 %v1326_v61, %v3109_v35  ;;  %v818_v35 = vld [vmem:[%s3657_s13 + $0x8] sm:$0xff] }
 0x28d   : > { %1581 = vmatpush.msra.mxu1 %v818_v35 }
 0x28e   : > { %2635 = vmatmul.msk.f32.gmra.mxu2 %vm892_vm0, %v1335_v3  ;;  %v1518_v3 = vpop.f32.mrf.mxu0 }
 0x296   : > { %2660 = vmatmul.msk.f32.vlgmr.msra.gmra.mxu2 %vm892_vm0, %v3138_v56  ;;  %v821_v56 = vld [vmem:[%s3658_s14 + $0x8] sm:$0xff]  ;;  %v1521_v39 = vpop.f32.mrf.mxu0 }
 0x297   : > { %1719 = vmatpush.msra.mxu3 %v821_v56 }
 0x29e   : > { %2661 = vmatmul.msk.f32.gmra.mxu2 %vm892_vm0, %v3146_v63  ;;  %v817_v63 = vld [vmem:[%s3657_s13] sm:$0xff] }
 0x29f   : > { %1582 = vmatpush.msra.mxu1 %v817_v63  ;;  %v3360_v63 = vld [vmem:[%s3687_s0] ss:$0 sm:$0xff] }
 0x2a6   : > { %2662 = vmatmul.msk.f32.gmra.mxu2 %vm892_vm0, %v3152_v10  ;;  %v820_v10 = vld [vmem:[%s3658_s14] sm:$0xff] }
 0x2a7   : > { %1720 = vmatpush.msra.mxu3 %v820_v10  ;;  %v3365_v10 = vld [vmem:[%s3688_s3] ss:$0 sm:$0xff] }
 0x2ae   : > { %2663 = vmatmul.msk.f32.gmra.mxu2 %vm892_vm0, %v3160_v7  ;;  %v1442_v7 = vpop.f32.mrf.mxu3 }
 0x2b6   : > { %2664 = vmatmul.msk.f32.gmra.mxu2 %vm892_vm0, %v3178_v12  ;;  %v1445_v12 = vpop.f32.mrf.mxu3 }
 0x2be   : > { %2665 = vmatmul.msk.f32.gmra.mxu2 %vm892_vm0, %v3197_v54  ;;  %v2728_v54 = vld [vmem:[%s3686_s6] ss:$0 sm:$0xff]  ;;  %v1448_v18 = vpop.f32.mrf.mxu3 }
 0x2c6   : > { %2666 = vmatmul.msk.f32.gmra.mxu2 %vm892_vm0, %v3206_v62  ;;  %v1451_v30 = vpop.f32.mrf.mxu3 }
 0x2ce   : > { %2667 = vmatmul.msk.f32.gmra.mxu2 %vm892_vm0, %v3216_v14  ;;  %v1454_v0 = vpop.f32.mrf.mxu3 }
 0x2d6   : > { %v1457_v41 = vpop.f32.mrf.mxu3 }
 0x2d9   : > { %v1377_v4 = vpop.f32.mrf.mxu2 }
 0x2da   : > { %v1466_v6 = vadd.f32 %v1442_v7, %v1377_v4  ;;  %v1524_v7 = vpop.f32.mrf.mxu0 }
 0x2dc   : > { %v1477_v11 = vadd.f32 %v2728_v54, %v1466_v6 }
 0x2de   : > { %v1485_v15 = vmul.f32 %v1477_v11, %v3134_v52  ;;  %v1460_v47 = vpop.f32.mrf.mxu3 }
 0x2e0   : > { %v1493_v48 = vmax.f32 %v1485_v15, 0.0 }
 0x2e1   : > { %v1380_v19 = vpop.f32.mrf.mxu2 }
 0x2e2   : > { %v1467_v21 = vadd.f32 %v1445_v12, %v1380_v19  ;;  %2652 = vmatmul.msk.f32.vlgmr.msra.gmra.mxu1 %vm1542_vm3, %v1493_v48  ;;  %2668 = vmatmul.msk.f32.vlgmr.msra.gmra.mxu3 %vm1542_vm3, %v1493_v48 }
 0x2e4   : > { %v1478_v62 = vadd.f32 %v2728_v54, %v1467_v21 }
 0x2e6   : > { %v1486_v14 = vmul.f32 %v1478_v62, %v3142_v59  ;;  %v1463_v57 = vpop.f32.mrf.mxu3 }
 0x2e8   : > { %v1494_v22 = vmax.f32 %v1486_v14, 0.0 }
 0x2e9   : > { %v1383_v23 = vpop.f32.mrf.mxu2 }
 0x2ea   : > { %v1468_v8 = vadd.f32 %v1448_v18, %v1383_v23  ;;  %2653 = vmatmul.msk.f32.gmra.mxu1 %vm1542_vm3, %v1494_v22  ;;  %2669 = vmatmul.msk.f32.gmra.mxu3 %vm1542_vm3, %v1494_v22  ;;  %v1527_v23 = vpop.f32.mrf.mxu0 }
 0x2ec   : > { %v1479_v25 = vadd.f32 %v2728_v54, %v1468_v8 }
 0x2ee   : > { %v1487_v29 = vmul.f32 %v1479_v25, %v3132_v50 }
 0x2f0   : > { %v1495_v31 = vmax.f32 %v1487_v29, 0.0 }
 0x2f1   : > { %v1386_v27 = vpop.f32.mrf.mxu2 }
 0x2f2   : > { %v1469_v32 = vadd.f32 %v1451_v30, %v1386_v27  ;;  %2654 = vmatmul.msk.f32.gmra.mxu1 %vm1542_vm3, %v1495_v31  ;;  %2670 = vmatmul.msk.f32.gmra.mxu3 %vm1542_vm3, %v1495_v31 }
 0x2f4   : > { %v1480_v34 = vadd.f32 %v2728_v54, %v1469_v32 }
 0x2f6   : > { %v1488_v37 = vmul.f32 %v1480_v34, %v3156_v17 }
 0x2f8   : > { %v1496_v1 = vmax.f32 %v1488_v37, 0.0 }
 0x2f9   : > { %v1389_v40 = vpop.f32.mrf.mxu2 }
 0x2fa   : > { %v1470_v43 = vadd.f32 %v1454_v0, %v1389_v40  ;;  %2655 = vmatmul.msk.f32.gmra.mxu1 %vm1542_vm3, %v1496_v1  ;;  %2671 = vmatmul.msk.f32.gmra.mxu3 %vm1542_vm3, %v1496_v1 }
 0x2fc   : > { %v1481_v13 = vadd.f32 %v2728_v54, %v1470_v43 }
 0x2fe   : > { %v1489_v44 = vmul.f32 %v1481_v13, %v3175_v38 }
 0x300   : > { %v1497_v2 = vmax.f32 %v1489_v44, 0.0 }
 0x301   : > { %v1392_v45 = vpop.f32.mrf.mxu2 }
 0x302   : > { %v1471_v16 = vadd.f32 %v1457_v41, %v1392_v45  ;;  %2656 = vmatmul.msk.f32.gmra.mxu1 %vm1542_vm3, %v1497_v2  ;;  %2672 = vmatmul.msk.f32.gmra.mxu3 %vm1542_vm3, %v1497_v2  ;;  %v1530_v41 = vpop.f32.mrf.mxu0 }
 0x304   : > { %v1482_v20 = vadd.f32 %v2728_v54, %v1471_v16 }
 0x306   : > { %v1490_v5 = vmul.f32 %v1482_v20, %v3186_v46 }
 0x308   : > { %v1498_v24 = vmax.f32 %v1490_v5, 0.0 }
 0x309   : > { %v1395_v49 = vpop.f32.mrf.mxu2 }
 0x30a   : > { %v1472_v33 = vadd.f32 %v1460_v47, %v1395_v49  ;;  %2657 = vmatmul.msk.f32.gmra.mxu1 %vm1542_vm3, %v1498_v24  ;;  %2673 = vmatmul.msk.f32.gmra.mxu3 %vm1542_vm3, %v1498_v24 }
 0x30c   : > { %v1483_v51 = vadd.f32 %v2728_v54, %v1472_v33 }
 0x30e   : > { %v1491_v53 = vmul.f32 %v1483_v51, %v3170_v26 }
 0x310   : > { %v1499_v55 = vmax.f32 %v1491_v53, 0.0 }
 0x311   : > { %v1398_v58 = vpop.f32.mrf.mxu2 }
 0x312   : > { %v1473_v60 = vadd.f32 %v1463_v57, %v1398_v58  ;;  %2658 = vmatmul.msk.f32.gmra.mxu1 %vm1542_vm3, %v1499_v55  ;;  %2674 = vmatmul.msk.f32.gmra.mxu3 %vm1542_vm3, %v1499_v55 }
 0x314   : > { %v1484_v36 = vadd.f32 %v2728_v54, %v1473_v60 }
 0x316   : > { %v1492_v28 = vmul.f32 %v1484_v36, %v3211_v9 }
 0x318   : > { %v1500_v61 = vmax.f32 %v1492_v28, 0.0 }
 0x319   : > { %v1681_v42 = vpop.f32.mrf.mxu2 }
 0x31a   : > { %2659 = vmatmul.msk.f32.gmra.mxu1 %vm1542_vm3, %v1500_v61  ;;  %2675 = vmatmul.msk.f32.gmra.mxu3 %vm1542_vm3, %v1500_v61 }
 0x321   : > { %v1684_v18 = vpop.f32.mrf.mxu2 }
 0x329   : > { %v1687_v27 = vpop.f32.mrf.mxu2 }
 0x331   : > { %v1690_v20 = vpop.f32.mrf.mxu2 }
 0x35f   : > { %v1584_v35 = vpop.f32.mrf.mxu1 }
 0x360   : > { %v1608_v56 = vadd.f32 %v1584_v35, %v1518_v3  ;;  %v1533_v3 = vpop.f32.mrf.mxu0 }
 0x362   : > { %v1619_v54 = vadd.f32 %v3360_v63, %v1608_v56 }
 0x364   : > { %v1627_v48 = vmax.f32 %v1619_v54, 0.0 }
 0x365   : > { %v1722_v12 = vpop.f32.mrf.mxu3 }
 0x366   : > { %v1746_v4 = vadd.f32 %v1722_v12, %v1681_v42  ;;  %v1636_v22 = vsel %vm1635_vm5, %v1627_v48, 0.0 }
 0x367   : > { %v1587_v6 = vpop.f32.mrf.mxu1 }
 0x368   : > { %v1609_v11 = vadd.f32 %v1587_v6, %v1521_v39  ;;  %v3369_v15 = vadd.f32 %v3365_v10, %v1746_v4  ;;  %v1966_v39 = vmul.f32 %v1627_v48, %v3134_v52  ;;  %v1536_v54 = vpop.f32.mrf.mxu0 }
 0x36a   : > { %v1620_v19 = vadd.f32 %v3360_v63, %v1609_v11  ;;  %v1766_v21 = vsel %vm1765_vm4, %v3369_v15, -inf }
 0x36b   : > { %1767 = vmax.xlane.f32.xlu1 %v1766_v21 }
 0x36c   : > { %v1628_v62 = vmax.f32 %v1620_v19, 0.0 }
 0x36d   : > { %v1725_v14 = vpop.f32.mrf.mxu3 }
 0x36e   : > { %v1637_v30 = vsel %vm1635_vm5, %v1628_v62, 0.0  ;;  %v1747_v44 = vadd.f32 %v1725_v14, %v1684_v18  ;;  %v1967_v61 = vmul.f32 %v1628_v62, %v3142_v59 }
 0x36f   : > { %v1638_v8 = vadd.f32 %v1637_v30, %v1636_v22  ;;  %v1590_v25 = vpop.f32.mrf.mxu1 }
 0x370   : > { %v1610_v29 = vadd.f32 %v1590_v25, %v1524_v7  ;;  %v3387_v33 = vadd.f32 %v3365_v10, %v1747_v44  ;;  %v1539_v14 = vpop.f32.mrf.mxu0 }
 0x372   : > { %v1621_v31 = vadd.f32 %v3360_v63, %v1610_v29  ;;  %v1769_v36 = vsel %vm1765_vm4, %v3387_v33, -inf }
 0x374   : > { %v1629_v32 = vmax.f32 %v1621_v31, 0.0 }
 0x375   : > { %v1728_v0 = vpop.f32.mrf.mxu3 }
 0x376   : > { %v1639_v34 = vsel %vm1635_vm5, %v1629_v32, 0.0  ;;  %v1748_v37 = vadd.f32 %v1728_v0, %v1687_v27  ;;  %v1968_v57 = vmul.f32 %v1629_v32, %v3132_v50  ;;  %v1693_v0 = vpop.f32.mrf.mxu2 }
 0x377   : > { %v1640_v1 = vadd.f32 %v1639_v34, %v1638_v8  ;;  %v1593_v40 = vpop.f32.mrf.mxu1 }
 0x378   : > { %v1611_v43 = vadd.f32 %v1593_v40, %v1527_v23  ;;  %v3379_v13 = vadd.f32 %v3365_v10, %v1748_v37 }
 0x37a   : > { %v1622_v2 = vadd.f32 %v3360_v63, %v1611_v43  ;;  %v1772_v45 = vsel %vm1765_vm4, %v3379_v13, -inf }
 0x37b   : > { %1773 = vmax.xlane.f32.xlu2 %v1772_v45 }
 0x37c   : > { %v1630_v16 = vmax.f32 %v1622_v2, 0.0 }
 0x37d   : > { %v1731_v5 = vpop.f32.mrf.mxu3 }
 0x37e   : > { %v1641_v47 = vsel %vm1635_vm5, %v1630_v16, 0.0  ;;  %v1969_v24 = vmul.f32 %v1630_v16, %v3156_v17  ;;  %v1749_v49 = vadd.f32 %v1731_v5, %v1690_v20 }
 0x37f   : > { %v3389_v51 = vadd.f32 %v1641_v47, %v1640_v1  ;;  %v1596_v53 = vpop.f32.mrf.mxu1 }
 0x380   : > { %v1612_v55 = vadd.f32 %v1596_v53, %v1530_v41  ;;  %2021 = vmatpush.msrb.mxu0 %v1969_v24  ;;  %v1760_v58 = vadd.f32 %v3365_v10, %v1749_v49 }
 0x382   : > { %v3394_v60 = vadd.f32 %v3360_v63, %v1612_v55  ;;  %2022 = vmatpush.msrb.mxu0 %v1968_v57  ;;  %v1775_v28 = vsel %vm1765_vm4, %v1760_v58, -inf }
 0x383   : > { %1770 = vmax.xlane.f32.xlu2 %v1769_v36  ;;  %1776 = vmax.xlane.f32.xlu0 %v1775_v28 }
 0x384   : > { %2023 = vmatpush.msrb.mxu0 %v1967_v61  ;;  %v1631_v56 = vmax.f32 %v3394_v60, 0.0 }
 0x385   : > { %v1734_v27 = vpop.f32.mrf.mxu3 }
 0x386   : > { %2024 = vmatpush.msrb.mxu0 %v1966_v39  ;;  %v1649_v4 = vsel %vm1635_vm5, %v1631_v56, 0.0 }
 0x387   : > { %v1599_v42 = vpop.f32.mrf.mxu1 }
 0x388   : > { %v1613_v35 = vadd.f32 %v1599_v42, %v1533_v3 }
 0x38a   : > { %v3403_v7 = vadd.f32 %v3360_v63, %v1613_v35 }
 0x38c   : > { %v1632_v12 = vmax.f32 %v3403_v7, 0.0 }
 0x38d   : > { %v1737_v1 = vpop.f32.mrf.mxu3 }
 0x38e   : > { %v1650_v6 = vsel %vm1635_vm5, %v1632_v12, 0.0 }
 0x38f   : > { %v1651_v11 = vadd.f32 %v1650_v6, %v1649_v4  ;;  %v1602_v18 = vpop.f32.mrf.mxu1 }
 0x390   : > { %v1614_v48 = vadd.f32 %v1602_v18, %v1536_v54 }
 0x392   : > { %v3413_v19 = vadd.f32 %v3360_v63, %v1614_v48 }
 0x394   : > { %v1633_v21 = vmax.f32 %v3413_v19, 0.0 }
 0x396   : > { %v1652_v62 = vsel %vm1635_vm5, %v1633_v21, 0.0 }
 0x397   : > { %v1653_v22 = vadd.f32 %v1652_v62, %v1651_v11  ;;  %v1605_v30 = vpop.f32.mrf.mxu1 }
 0x398   : > { %v1615_v23 = vadd.f32 %v1605_v30, %v1539_v14 }
 0x39a   : > { %v3420_v8 = vadd.f32 %v3360_v63, %v1615_v23  ;;  %v1696_v63 = vpop.f32.mrf.mxu2 }
 0x39b   : > { %v1751_v43 = vadd.f32 %v1737_v1, %v1696_v63 }
 0x39c   : > { %v1634_v25 = vmax.f32 %v3420_v8, 0.0 }
 0x39d   : > { %v1762_v2 = vadd.f32 %v3365_v10, %v1751_v43 }
 0x39e   : > { %v1654_v29 = vsel %vm1635_vm5, %v1634_v25, 0.0 }
 0x39f   : > { %v3426_v31 = vadd.f32 %v1654_v29, %v1653_v22  ;;  %v1781_v20 = vsel %vm1765_vm4, %v1762_v2, -inf }
 0x3a2   : > { %v1699_v36 = vpop.f32.mrf.mxu2 }
 0x3aa   : > { %v1702_v4 = vpop.f32.mrf.mxu2 }
 0x3de   : > { %v1768_v32 = vpop.xlane.xlu1 %1767 }
 0x3df   : > { %v1790_v34 = vsub.f32 %v3369_v15, %v1768_v32 }
 0x3e1   : > { %v1798_v37 = vmul.f32 1.442695, %v1790_v34 }
 0x3e3   : > { %2750 = vpow2.f32 %v1798_v37 }
 0x3e9   : > { %v3429_v40 = vpop.eup %2750 }
 0x3ea   : > { %v1814_v41 = vsel %vm1765_vm4, %v3429_v40, 0.0 }
 0x3eb   : > { %1815 = vadd.xlane.f32.xlu1 %v1814_v41 }
 0x3ee   : > { %v1774_v44 = vpop.xlane.xlu2 %1773 }
 0x3ef   : > { %v1792_v45 = vsub.f32 %v3379_v13, %v1774_v44  ;;  %v1740_v13 = vpop.f32.mrf.mxu3 }
 0x3f0   : > { %v1752_v3 = vadd.f32 %v1740_v13, %v1699_v36 }
 0x3f1   : > { %v1802_v16 = vmul.f32 1.442695, %v1792_v45 }
 0x3f2   : > { %v1763_v42 = vadd.f32 %v3365_v10, %v1752_v3 }
 0x3f3   : > { %2752 = vpow2.f32 %v1802_v16  ;;  %1782 = vmax.xlane.f32.xlu1 %v1781_v20 }
 0x3f4   : > { %v1784_v6 = vsel %vm1765_vm4, %v1763_v42, -inf }
 0x3f6   : > { %v1771_v15 = vpop.xlane.xlu2 %1770  ;;  %v1777_v5 = vpop.xlane.xlu0 %1776 }
 0x3f7   : > { %v1791_v47 = vsub.f32 %v3387_v33, %v1771_v15  ;;  %v1793_v24 = vsub.f32 %v1760_v58, %v1777_v5  ;;  %v1750_v58 = vadd.f32 %v1734_v27, %v1693_v0  ;;  %v1743_v54 = vpop.f32.mrf.mxu3 }
 0x3f8   : > { %v1753_v11 = vadd.f32 %v1743_v54, %v1702_v4 }
 0x3f9   : > { %v3437_v49 = vpop.eup %2752  ;;  %v1800_v53 = vmul.f32 1.442695, %v1791_v47  ;;  %v1804_v55 = vmul.f32 1.442695, %v1793_v24  ;;  %v3451_v35 = vadd.f32 %v3365_v10, %v1750_v58 }
 0x3fa   : > { %v1820_v57 = vsel %vm1765_vm4, %v3437_v49, 0.0  ;;  %v3457_v48 = vadd.f32 %v3365_v10, %v1753_v11 }
 0x3fb   : > { %2754 = vpow2.f32 %v1800_v53  ;;  %1821 = vadd.xlane.f32.xlu2 %v1820_v57  ;;  %v1778_v18 = vsel %vm1765_vm4, %v3451_v35, -inf }
 0x3fc   : > { %2756 = vpow2.f32 %v1804_v55  ;;  %v1787_v62 = vsel %vm1765_vm4, %v3457_v48, -inf }
 0x401   : > { %v3441_v28 = vpop.eup %2754 }
 0x402   : > { %v3443_v61 = vpop.eup %2756  ;;  %v1817_v33 = vsel %vm1765_vm4, %v3441_v28, 0.0 }
 0x403   : > { %1818 = vadd.xlane.f32.xlu2 %v1817_v33  ;;  %v1823_v39 = vsel %vm1765_vm4, %v3443_v61, 0.0 }
 0x404   : > { %1824 = vadd.xlane.f32.xlu0 %v1823_v39 }
 0x40b   : > { %1785 = vmax.xlane.f32.xlu2 %v1784_v6 }
 0x40c   : > { %1779 = vmax.xlane.f32.xlu0 %v1778_v18 }
 0x414   : > { %1788 = vmax.xlane.f32.xlu0 %v1787_v62 }
 0x45e   : > { %v3461_v14 = vpop.xlane.xlu1 %1815 }
 0x45f   : > { %2758 = vrcp.f32 %v3461_v14  ;;  %v1847_v45 = vand.u32 2147483647, %v3461_v14  ;;  %vm1843_vm6 = vweird.f32 %v3461_v14  ;;  %v1849_v53 = vand.u32 2147483648, %v3461_v14 }
 0x461   : > { %vm3478_vm9 = vcmp.eq.f32.partialorder %v1847_v45, 8.507059e+37 }
 0x465   : > { %v3464_v27 = vpop.eup %2758 }
 0x466   : > { %v1783_v22 = vpop.xlane.xlu1 %1782  ;;  %v1839_v10 = vmul.f32 %v3464_v27, %v3461_v14  ;;  %vm1844_vm8 = vweird.f32 %v3464_v27 }
 0x467   : > { %v1795_v30 = vsub.f32 %v1762_v2, %v1783_v22  ;;  %vm3497_vm15 = vmor %vm1843_vm6, %vm1844_vm8 }
 0x468   : > { %v1840_v37 = vsub.f32 1.0, %v1839_v10 }
 0x469   : > { %v1808_v23 = vmul.f32 1.442695, %v1795_v30 }
 0x46a   : > { %v1841_v44 = vmul.f32 %v3464_v27, %v1840_v37 }
 0x46b   : > { %2760 = vpow2.f32 %v1808_v23 }
 0x46c   : > { %v1842_v24 = vadd.f32 %v3464_v27, %v1841_v44 }
 0x46e   : > { %v1822_v29 = vpop.xlane.xlu2 %1821  ;;  %v1846_v44 = vsel %vm3497_vm15, %v3464_v27, %v1842_v24 }
 0x46f   : > { %2762 = vrcp.f32 %v1822_v29  ;;  %v1877_v16 = vand.u32 2147483647, %v1822_v29  ;;  %v1879_v20 = vand.u32 2147483648, %v1822_v29  ;;  %vm1873_vm10 = vweird.f32 %v1822_v29 }
 0x471   : > { %v3466_v32 = vpop.eup %2760  ;;  %vm3482_vm11 = vcmp.eq.f32.partialorder %v1877_v16, 8.507059e+37  ;;  %v1880_v54 = vor.u32 1.1754944e-38, %v1879_v20 }
 0x472   : > { %v1829_v0 = vsel %vm1765_vm4, %v3466_v32, 0.0 }
 0x473   : > { %1830 = vadd.xlane.f32.xlu2 %v1829_v0 }
 0x475   : > { %v2763_v34 = vpop.eup %2762 }
 0x476   : > { %v1869_v1 = vmul.f32 %v2763_v34, %v1822_v29  ;;  %v1819_v63 = vpop.xlane.xlu2 %1818  ;;  %vm1874_vm7 = vweird.f32 %v2763_v34 }
 0x477   : > { %2764 = vrcp.f32 %v1819_v63  ;;  %v1825_v43 = vpop.xlane.xlu0 %1824  ;;  %vm3486_vm12 = vmor %vm1873_vm10, %vm1874_vm7  ;;  %v1862_v6 = vand.u32 2147483647, %v1819_v63  ;;  %v1864_v62 = vand.u32 2147483648, %v1819_v63  ;;  %vm1858_vm1 = vweird.f32 %v1819_v63 }
 0x478   : > { %v1870_v41 = vsub.f32 1.0, %v1869_v1  ;;  %2766 = vrcp.f32 %v1825_v43  ;;  %v1894_v29 = vand.u32 2147483648, %v1825_v43  ;;  %v1892_v0 = vand.u32 2147483647, %v1825_v43 }
 0x479   : > { %v1865_v1 = vor.u32 1.1754944e-38, %v1864_v62  ;;  %vm1888_vm3 = vweird.f32 %v1825_v43  ;;  %vm1863_vm7 = vcmp.eq.f32.partialorder %v1862_v6, 8.507059e+37 }
 0x47a   : > { %v1871_v2 = vmul.f32 %v2763_v34, %v1870_v41  ;;  %v1895_v14 = vor.u32 1.1754944e-38, %v1894_v29  ;;  %vm1893_vm8 = vcmp.eq.f32.partialorder %v1892_v0, 8.507059e+37 }
 0x47c   : > { %v1872_v5 = vadd.f32 %v2763_v34, %v1871_v2  ;;  %v1850_v2 = vor.u32 1.1754944e-38, %v1849_v53 }
 0x47d   : > { %v2765_v15 = vpop.eup %2764 }
 0x47e   : > { %v2767_v47 = vpop.eup %2766  ;;  %v1854_v55 = vmul.f32 %v2765_v15, %v1819_v63  ;;  %v1786_v57 = vpop.xlane.xlu2 %1785  ;;  %v1876_v18 = vsel %vm3486_vm12, %v2763_v34, %v1872_v5  ;;  %vm1859_vm13 = vweird.f32 %v2765_v15 }
 0x47f   : > { %v1884_v3 = vmul.f32 %v2767_v47, %v1825_v43  ;;  %v1780_v33 = vpop.xlane.xlu0 %1779  ;;  %v1796_v58 = vsub.f32 %v1763_v42, %v1786_v57  ;;  %vm1889_vm14 = vweird.f32 %v2767_v47  ;;  %v1881_v34 = vsel %vm3482_vm11, %v1880_v54, %v1876_v18  ;;  %vm1860_vm2 = vmor %vm1858_vm1, %vm1859_vm13 }
 0x480   : > { %v1855_v4 = vsub.f32 1.0, %v1854_v55  ;;  %v1794_v11 = vsub.f32 %v3451_v35, %v1780_v33  ;;  %vm1890_vm6 = vmor %vm1888_vm3, %vm1889_vm14  ;;  %v1882_v63 = vmul.f32 %v3437_v49, %v1881_v34  ;;  %v1851_v43 = vsel %vm3478_vm9, %v1850_v2, %v1846_v44 }
 0x481   : > { %v1885_v22 = vsub.f32 1.0, %v1884_v3  ;;  %v1810_v30 = vmul.f32 1.442695, %v1796_v58  ;;  %v1852_v3 = vmul.f32 %v3429_v40, %v1851_v43  ;;  %v2787_v40 = vld [vmem:[%s2978_s8 + $0x8] sm:$0xff] }
 0x482   : > { %v1856_v23 = vmul.f32 %v2765_v15, %v1855_v4  ;;  %v1806_v10 = vmul.f32 1.442695, %v1794_v11 }
 0x483   : > { %v1886_v42 = vmul.f32 %v2767_v47, %v1885_v22  ;;  %2768 = vpow2.f32 %v1810_v30  ;;  %v1958_v33 = vmul.f32 %v1852_v3, %v3134_v52 }
 0x484   : > { %v1857_v37 = vadd.f32 %v2765_v15, %v1856_v23  ;;  %2770 = vpow2.f32 %v1806_v10 }
 0x485   : > { %v1887_v41 = vadd.f32 %v2767_v47, %v1886_v42 }
 0x486   : > { %v1861_v45 = vsel %vm1860_vm2, %v2765_v15, %v1857_v37 }
 0x487   : > { %v1891_v16 = vsel %vm1890_vm6, %v2767_v47, %v1887_v41  ;;  %v1789_v20 = vpop.xlane.xlu0 %1788  ;;  %v1866_v5 = vsel %vm1863_vm7, %v1865_v1, %v1861_v45 }
 0x488   : > { %v1896_v55 = vsel %vm1893_vm8, %v1895_v14, %v1891_v16  ;;  %v1797_v57 = vsub.f32 %v3457_v48, %v1789_v20  ;;  %v1867_v24 = vmul.f32 %v3441_v28, %v1866_v5  ;;  %v1960_v48 = vmul.f32 %v1882_v63, %v3132_v50 }
 0x489   : > { %v3511_v36 = vpop.eup %2768  ;;  %v1897_v27 = vmul.f32 %v3443_v61, %v1896_v55 }
 0x48a   : > { %v3515_v53 = vpop.eup %2770  ;;  %v1812_v15 = vmul.f32 1.442695, %v1797_v57  ;;  %v1832_v47 = vsel %vm1765_vm4, %v3511_v36, 0.0  ;;  %v1959_v61 = vmul.f32 %v1867_v24, %v3142_v59 }
 0x48b   : > { %v1826_v49 = vsel %vm1765_vm4, %v3515_v53, 0.0  ;;  %1833 = vadd.xlane.f32.xlu0 %v1832_v47  ;;  %v1961_v13 = vmul.f32 %v1897_v27, %v3156_v17  ;;  %v2786_v17 = vld [vmem:[%s2978_s8] sm:$0xff] }
 0x48c   : > { %2772 = vpow2.f32 %v1812_v15  ;;  %1827 = vadd.xlane.f32.xlu1 %v1826_v49  ;;  %v2029_v58 = vpack.c.bf16 %v1959_v61, %v1958_v33 }
 0x48d   : > { %v2030_v28 = vpack.c.bf16 %v1961_v13, %v1960_v48 }
 0x48f   : > { %2037 = vmatpush.bf16.msrb.mxu1 %v2030_v28 }
 0x492   : > { %v3526_v39 = vpop.eup %2772 }
 0x493   : > { %2038 = vmatpush.bf16.msrb.mxu1 %v2029_v58  ;;  %v1835_v50 = vsel %vm1765_vm4, %v3526_v39, 0.0 }
 0x494   : > { %1836 = vadd.xlane.f32.xlu1 %v1835_v50 }
 0x496   : > { %2677 = vmatmul.msk.bf16.vlgmr.msrb.gmra.mxu1 %vm892_vm0, %v2786_v17 }
 0x49c   : > { %1974 = vxpose.xlu2.b32.start [1/4] (short) (narrow) %v1958_v33, 8 }
 0x4a4   : > { %1975 = vxpose.xlu2.b32.cont [2/4] (short) (narrow) %v1959_v61, 8 }
 0x4a6   : > { %2678 = vmatmul.msk.bf16.gmra.mxu1 %vm892_vm0, %v2787_v40 }
 0x4ac   : > { %1976 = vxpose.xlu2.b32.cont [3/4] (short) (narrow) %v1960_v48, 8 }
 0x4b4   : > { %1977 = vxpose.xlu2.b32.end [4/4] (short) (narrow) %v1961_v13, 8 }
 0x4e6   : > { %v1831_v59 = vpop.xlane.xlu2 %1830 }
 0x4e7   : > { %2774 = vrcp.f32 %v1831_v59  ;;  %v1924_v44 = vand.u32 2147483648, %v1831_v59  ;;  %vm1918_vm13 = vweird.f32 %v1831_v59  ;;  %v1922_v14 = vand.u32 2147483647, %v1831_v59 }
 0x4e9   : > { %v1925_v57 = vor.u32 1.1754944e-38, %v1924_v44  ;;  %vm1923_vm1 = vcmp.eq.f32.partialorder %v1922_v14, 8.507059e+37 }
 0x4ed   : > { %v2775_v52 = vpop.eup %2774 }
 0x4ee   : > { %v1914_v6 = vmul.f32 %v2775_v52, %v1831_v59  ;;  %vm1919_vm10 = vweird.f32 %v2775_v52 }
 0x4ef   : > { %vm1920_vm15 = vmor %vm1918_vm13, %vm1919_vm10 }
 0x4f0   : > { %v1915_v18 = vsub.f32 1.0, %v1914_v6 }
 0x4f2   : > { %v1916_v23 = vmul.f32 %v2775_v52, %v1915_v18 }
 0x4f4   : > { %v1917_v34 = vadd.f32 %v2775_v52, %v1916_v23  ;;  %v1970_v23 = vmul.f32 %v1631_v56, %v3175_v38  ;;  %v2788_v56 = vld [vmem:[%s2978_s8 + $0x10] sm:$0xff] }
 0x4f6   : > { %v1921_v20 = vsel %vm1920_vm15, %v2775_v52, %v1917_v34  ;;  %v829_v34 = vld [vmem:[%s3663_s19 + $0x8] sm:$0xff] }
 0x4f7   : > { %v1926_v24 = vsel %vm1923_vm1, %v1925_v57, %v1921_v20  ;;  %v834_v57 = vld [vmem:[%s3666_s22] sm:$0xff] }
 0x4f8   : > { %v1927_v13 = vmul.f32 %v3466_v32, %v1926_v24 }
 0x4fe   : > { %v1834_v54 = vpop.xlane.xlu0 %1833 }
 0x4ff   : > { %v1828_v4 = vpop.xlane.xlu1 %1827  ;;  %2776 = vrcp.f32 %v1834_v54  ;;  %v1939_v49 = vand.u32 2147483648, %v1834_v54  ;;  %vm1933_vm3 = vweird.f32 %v1834_v54  ;;  %v1937_v48 = vand.u32 2147483647, %v1834_v54 }
 0x500   : > { %2778 = vrcp.f32 %v1828_v4  ;;  %v1909_v42 = vand.u32 2147483648, %v1828_v4  ;;  %v1907_v35 = vand.u32 2147483647, %v1828_v4  ;;  %vm1903_vm11 = vweird.f32 %v1828_v4 }
 0x501   : > { %v1940_v61 = vor.u32 1.1754944e-38, %v1939_v49  ;;  %vm1938_vm6 = vcmp.eq.f32.partialorder %v1937_v48, 8.507059e+37  ;;  %v2731_v48 = vld [vmem:[%s3659_s15] ss:$0 sm:$0xff] }
 0x502   : > { %v1910_v2 = vor.u32 1.1754944e-38, %v1909_v42  ;;  %vm1908_vm14 = vcmp.eq.f32.partialorder %v1907_v35, 8.507059e+37 }
 0x505   : > { %v2777_v11 = vpop.eup %2776 }
 0x506   : > { %v2779_v62 = vpop.eup %2778  ;;  %v1929_v10 = vmul.f32 %v2777_v11, %v1834_v54  ;;  %vm1934_vm2 = vweird.f32 %v2777_v11 }
 0x507   : > { %v1899_v22 = vmul.f32 %v2779_v62, %v1828_v4  ;;  %v1837_v30 = vpop.xlane.xlu1 %1836  ;;  %vm1904_vm9 = vweird.f32 %v2779_v62  ;;  %vm1935_vm7 = vmor %vm1933_vm3, %vm1934_vm2 }
 0x508   : > { %2780 = vrcp.f32 %v1837_v30  ;;  %v1930_v1 = vsub.f32 1.0, %v1929_v10  ;;  %vm1905_vm12 = vmor %vm1903_vm11, %vm1904_vm9  ;;  %v1954_v17 = vand.u32 2147483648, %v1837_v30  ;;  %vm1948_vm9 = vweird.f32 %v1837_v30 }
 0x509   : > { %v1900_v29 = vsub.f32 1.0, %v1899_v22  ;;  %v1952_v40 = vand.u32 2147483647, %v1837_v30 }
 0x50a   : > { %v1931_v63 = vmul.f32 %v2777_v11, %v1930_v1  ;;  %v1955_v32 = vor.u32 1.1754944e-38, %v1954_v17  ;;  %v828_v1 = vld [vmem:[%s3663_s19] sm:$0xff] }
 0x50b   : > { %v1901_v0 = vmul.f32 %v2779_v62, %v1900_v29  ;;  %vm1953_vm11 = vcmp.eq.f32.partialorder %v1952_v40, 8.507059e+37 }
 0x50c   : > { %v1932_v15 = vadd.f32 %v2777_v11, %v1931_v63 }
 0x50d   : > { %v1902_v37 = vadd.f32 %v2779_v62, %v1901_v0 }
 0x50e   : > { %v2781_v41 = vpop.eup %2780  ;;  %v1936_v3 = vsel %vm1935_vm7, %v2777_v11, %v1932_v15 }
 0x50f   : > { %v1906_v45 = vsel %vm1905_vm12, %v2779_v62, %v1902_v37  ;;  %v1944_v5 = vmul.f32 %v2781_v41, %v1837_v30  ;;  %v1941_v58 = vsel %vm1938_vm6, %v1940_v61, %v1936_v3  ;;  %vm1949_vm8 = vweird.f32 %v2781_v41  ;;  %v827_v37 = vld [vmem:[%s3662_s18 + $0x8] sm:$0xff] }
 0x510   : > { %v1911_v16 = vsel %vm1908_vm14, %v1910_v2, %v1906_v45  ;;  %v1942_v59 = vmul.f32 %v3511_v36, %v1941_v58  ;;  %vm1950_vm10 = vmor %vm1948_vm9, %vm1949_vm8  ;;  %v1973_v36 = vmul.f32 %v1634_v25, %v3211_v9  ;;  %v1971_v30 = vmul.f32 %v1632_v12, %v3186_v46  ;;  %v2789_v12 = vld [vmem:[%s2978_s8 + $0x18] sm:$0xff] }
 0x511   : > { %v1912_v55 = vmul.f32 %v3515_v53, %v1911_v16  ;;  %v1945_v47 = vsub.f32 1.0, %v1944_v5  ;;  %v1963_v53 = vmul.f32 %v1927_v13, %v3186_v46 }
 0x512   : > { %v1964_v54 = vmul.f32 %v1942_v59, %v3170_v26 }
 0x513   : > { %v1962_v43 = vmul.f32 %v1912_v55, %v3175_v38  ;;  %v2040_v27 = vpop.f32.mrf.mxu1  ;;  %v1946_v28 = vmul.f32 %v2781_v41, %v1945_v47  ;;  %v835_v55 = vld [vmem:[%s3666_s22 + $0x8] sm:$0xff] }
 0x515   : > { %2070 = vxpose.xlu0.b32.start [1/4] (short) (narrow) %v1962_v43, 8  ;;  %v1947_v50 = vadd.f32 %v2781_v41, %v1946_v28  ;;  %v2125_v8 = vpack.c.bf16 %v1963_v53, %v1962_v43 }
 0x517   : > { %v1951_v52 = vsel %vm1950_vm10, %v2781_v41, %v1947_v50  ;;  %v826_v41 = vld [vmem:[%s3662_s18] sm:$0xff] }
 0x518   : > { %v1956_v6 = vsel %vm1953_vm11, %v1955_v32, %v1951_v52  ;;  %v833_v52 = vld [vmem:[%s3665_s21 + $0x8] sm:$0xff]  ;;  %v832_v32 = vld [vmem:[%s3665_s21] sm:$0xff] }
 0x519   : > { %v1957_v11 = vmul.f32 %v3526_v39, %v1956_v6  ;;  %v1972_v39 = vmul.f32 %v1633_v21, %v3170_v26  ;;  %v2166_v26 = vlaneseq  ;;  %v837_v6 = vld [vmem:[%s3667_s23 + $0x8] sm:$0xff] }
 0x51b   : > { %v2042_v33 = vpop.f32.mrf.mxu1  ;;  %v1965_v18 = vmul.f32 %v1957_v11, %v3211_v9  ;;  %v2167_v21 = vshrl.u32 %v2166_v26, 7  ;;  %v2169_v25 = vand.u32 127, %v2166_v26  ;;  %v836_v11 = vld [vmem:[%s3667_s23] sm:$0xff] }
 0x51d   : > { %2071 = vxpose.xlu0.b32.cont [2/4] (short) (narrow) %v1963_v53, 8  ;;  %v2126_v9 = vpack.c.bf16 %v1965_v18, %v1964_v54  ;;  %vm2170_vm12 = vcmp.eq.s32.totalorder %v2167_v21, %v2169_v25  ;;  %v831_v53 = vld [vmem:[%s3664_s20 + $0x8] sm:$0xff] }
 0x523   : > { %v2045_v4 = vpop.f32.mrf.mxu1 }
 0x525   : > { %2072 = vxpose.xlu0.b32.cont [3/4] (short) (narrow) %v1964_v54, 8 }
 0x52b   : > { %v2047_v62 = vpop.f32.mrf.mxu1 }
 0x52c   : > { %2062 = vmatpush.msra.mxu0 %v2047_v62 }
 0x52d   : > { %2073 = vxpose.xlu0.b32.end [4/4] (short) (narrow) %v1965_v18, 8 }
 0x52e   : > { %2063 = vmatpush.msra.mxu0 %v2045_v4 }
 0x530   : > { %2064 = vmatpush.msra.mxu0 %v2042_v33  ;;  %v830_v33 = vld [vmem:[%s3664_s20] sm:$0xff] }
 0x532   : > { %2065 = vmatpush.msra.mxu0 %v2040_v27 }
 0x535   : > { %v1990_v22 = vpop.trf.xlu2 }
 0x536   : > { %2676 = vmatmul.msk.f32.vlgmr.msrb.gmra.mxu0 %vm892_vm0, %v1990_v22 }
 0x537   : > { %2117 = vmatpush.msrb.mxu0 %v1973_v36  ;;  %v2732_v36 = vld [vmem:[%s3660_s16] ss:$0 sm:$0xff] }
 0x539   : > { %2118 = vmatpush.msrb.mxu0 %v1972_v39 }
 0x53b   : > { %2119 = vmatpush.msrb.mxu0 %v1971_v30 }
 0x53d   : > { %2120 = vmatpush.msrb.mxu0 %v1970_v23 }
 0x53e   : > { %2679 = vmatmul.msk.f32.vlgmr.msra.gmra.mxu0 %vm892_vm0, %v1990_v22 }
 0x53f   : > { %2133 = vmatpush.bf16.msra.mxu0 %v2126_v9 }
 0x543   : > { %2134 = vmatpush.bf16.msra.mxu0 %v2125_v8 }
 0x5b3   : > { %v2026_v19 = vpop.f32.mrf.mxu0 }
 0x5b9   : > { %v2086_v7 = vpop.trf.xlu0 }
 0x5ba   : > { %2680 = vmatmul.msk.f32.vlgmr.msrb.gmra.mxu0 %vm892_vm0, %v2086_v7 }
 0x5bb   : > { %v2067_v46 = vpop.f32.mrf.mxu0  ;;  %2251 = vmatpush.msrb.mxu0 %v827_v37 }
 0x5bc   : > { %v2171_v38 = vsel %vm2170_vm12, 1.0, %v2067_v46 }
 0x5bd   : > { %v2173_v60 = vsel %vm1765_vm4, %v2171_v38, 0.0  ;;  %2252 = vmatpush.msrb.mxu0 %v826_v41  ;;  %v1643_v41 = vrot.slane %v3389_v51, 4 }
 0x5be   : > { %2174 = vadd.xlane.f32.xlu1 %v2173_v60 }
 0x5c2   : > { %2681 = vmatmul.msk.bf16.vlgmr.msra.gmra.mxu0 %vm892_vm0, %v2788_v56 }
 0x5c3   : > { %2421 = vmatpush.msra.mxu0 %v835_v55 }
 0x5c5   : > { %2422 = vmatpush.msra.mxu0 %v834_v57 }
 0x5d2   : > { %2682 = vmatmul.msk.bf16.gmra.mxu0 %vm892_vm0, %v2789_v12 }
 0x631   : > { %v2175_v44 = vpop.xlane.xlu1 %2174 }
 0x632   : > { %v2179_v2 = vmax.f32 %v2175_v44, 1.0  ;;  %v1644_v44 = vadd.f32 %v1643_v41, %v3389_v51 }
 0x634   : > { %2782 = vrcp.f32 %v2179_v2  ;;  %v1645_v2 = vrot.slane %v1644_v44, 2 }
 0x637   : > { %v2122_v29 = vpop.f32.mrf.mxu0 }
 0x63a   : > { %v2783_v20 = vpop.eup %2782 }
 0x63f   : > { %v2136_v10 = vpop.f32.mrf.mxu0 }
 0x647   : > { %v2138_v42 = vpop.f32.mrf.mxu0 }
 0x64f   : > { %v2141_v0 = vpop.f32.mrf.mxu0 }
 0x657   : > { %v2143_v35 = vpop.f32.mrf.mxu0 }
 0x658   : > { %2158 = vmatpush.msra.mxu1 %v2143_v35 }
 0x65a   : > { %2159 = vmatpush.msra.mxu1 %v2141_v0 }
 0x65c   : > { %2160 = vmatpush.msra.mxu1 %v2138_v42 }
 0x65e   : > { %2161 = vmatpush.msra.mxu1 %v2136_v10 }
 0x65f   : > { %2683 = vmatmul.msk.f32.vlgmr.msra.gmra.mxu1 %vm892_vm0, %v2086_v7  ;;  %v2733_v7 = vld [vmem:[%s3661_s17] ss:$0 sm:$0xff]  ;;  %vm2494_vm0 = vcmask 253952  }
 0x660   : > { %2201 = vmatpush.msrb.mxu1 %v2026_v19 }
 0x662   : > { %2224 = vmatpush.msra.mxu1 %v2122_v29 }
 0x667   : > { %2684 = vmatmul.msk.f32.vlgmr.msrb.gmra.mxu1 %vm1765_vm4, %v2171_v38 }
 0x668   : > { %2280 = vmatpush.msrb.mxu1 %v829_v34 }
 0x66a   : > { %2281 = vmatpush.msrb.mxu1 %v828_v1 }
 0x6dc   : > { %v2163_v14 = vpop.f32.mrf.mxu1 }
 0x6dd   : > { %v2172_v45 = vsel %vm2170_vm12, 1.0, %v2163_v14 }
 0x6de   : > { %2685 = vmatmul.msk.f32.vlgmr.msra.gmra.mxu1 %vm1765_vm4, %v2172_v45  ;;  %v2176_v16 = vsel %vm1765_vm4, %v2172_v45, 0.0 }
 0x6df   : > { %2177 = vadd.xlane.f32.xlu1 %v2176_v16  ;;  %2450 = vmatpush.msra.mxu1 %v837_v6 }
 0x6e1   : > { %2451 = vmatpush.msra.mxu1 %v836_v11 }
 0x6e4   : > { %v2203_v63 = vpop.f32.mrf.mxu1 }
 0x6e5   : > { %v2229_v5 = vmul.f32 %v2783_v20, %v2203_v63  ;;  %v1646_v63 = vadd.f32 %v1645_v2, %v1644_v44 }
 0x6e6   : > { %2688 = vmatmul.msk.f32.vlgmr.msrb.gmra.mxu1 %vm1635_vm5, %v2026_v19 }
 0x6e7   : > { %2686 = vmatmul.msk.f32.vlgmr.msrb.gmra.mxu0 %vm1635_vm5, %v2229_v5 }
 0x6ee   : > { %2689 = vmatmul.msk.f32.gmra.mxu1 %vm1635_vm5, %v2122_v29 }
 0x752   : > { %v2178_v43 = vpop.xlane.xlu1 %2177 }
 0x753   : > { %v2180_v27 = vmax.f32 %v2178_v43, 1.0  ;;  %v1647_v43 = vrot.slane %v1646_v63, 1 }
 0x755   : > { %2784 = vrcp.f32 %v2180_v27 }
 0x75b   : > { %v2785_v24 = vpop.eup %2784  ;;  %v2226_v15 = vpop.f32.mrf.mxu1 }
 0x75c   : > { %v2230_v47 = vmul.f32 %v2785_v24, %v2226_v15  ;;  %v1648_v15 = vadd.f32 %v1647_v43, %v1646_v63 }
 0x75e   : > { %2687 = vmatmul.msk.f32.gmra.mxu0 %vm1635_vm5, %v2230_v47  ;;  %v1662_v51 = vmul.f32 0.03125, %v1648_v15 }
 0x763   : > { %v2283_v49 = vpop.f32.mrf.mxu1 }
 0x764   : > { %v2254_v13 = vpop.f32.mrf.mxu0 }
 0x765   : > { %v2289_v3 = vadd.f32 %v2283_v49, %v2254_v13 }
 0x767   : > { %v2294_v28 = vadd.f32 %v2731_v48, %v2289_v3 }
 0x769   : > { %v2296_v61 = vmax.f32 %v2294_v28, 0.0 }
 0x76b   : > { %2313 = vmatpush.msrb.mxu2 %v2296_v61  ;;  %2696 = vmatmul.msk.f32.vlgmr.msra.gmra.mxu0 %vm1635_vm5, %v2296_v61  ;;  %v2286_v58 = vpop.f32.mrf.mxu1 }
 0x76c   : > { %2690 = vmatmul.msk.f32.vlgmr.msrb.gmra.mxu2 %vm1765_vm4, %v2171_v38 }
 0x76d   : > { %2360 = vmatpush.msra.mxu2 %v831_v53 }
 0x76f   : > { %2361 = vmatpush.msra.mxu2 %v830_v33 }
 0x7db   : > { %v2257_v50 = vpop.f32.mrf.mxu0 }
 0x7dc   : > { %v2290_v17 = vadd.f32 %v2286_v58, %v2257_v50 }
 0x7de   : > { %v2295_v40 = vadd.f32 %v2731_v48, %v2290_v17 }
 0x7e0   : > { %v2297_v59 = vmax.f32 %v2295_v40, 0.0 }
 0x7e2   : > { %2333 = vmatpush.msrb.mxu3 %v2297_v59  ;;  %2697 = vmatmul.msk.f32.gmra.mxu0 %vm1635_vm5, %v2297_v59 }
 0x7e3   : > { %2691 = vmatmul.msk.f32.vlgmr.msrb.gmra.mxu3 %vm1765_vm4, %v2172_v45 }
 0x7e4   : > { %2389 = vmatpush.msra.mxu3 %v833_v52 }
 0x7e6   : > { %2390 = vmatpush.msra.mxu3 %v832_v32 }
 0x7e8   : > { %v2424_v46 = vpop.f32.mrf.mxu0 }
 0x7eb   : > { %2694 = vmatmul.msk.f32.vlgmr.msra.gmra.mxu3 %vm1635_vm5, %v2296_v61  ;;  %v1656_v61 = vrot.slane %v3426_v31, 4 }
 0x7ed   : > { %v1657_v53 = vadd.f32 %v1656_v61, %v3426_v31 }
 0x7ef   : > { %v2315_v54 = vpop.f32.mrf.mxu2  ;;  %v1658_v33 = vrot.slane %v1657_v53, 2 }
 0x7f0   : > { %v2338_v4 = vmul.f32 %v2783_v20, %v2315_v54 }
 0x7f1   : > { %v1659_v58 = vadd.f32 %v1658_v33, %v1657_v53 }
 0x7f2   : > { %2692 = vmatmul.msk.f32.vlgmr.msra.gmra.mxu2 %vm1635_vm5, %v2338_v4 }
 0x7f3   : > { %2695 = vmatmul.msk.f32.gmra.mxu3 %vm1635_vm5, %v2297_v59  ;;  %v1660_v50 = vrot.slane %v1659_v58, 1 }
 0x7f5   : > { %v1661_v17 = vadd.f32 %v1660_v50, %v1659_v58 }
 0x7f7   : > { %v1663_v40 = vmul.f32 0.03125, %v1661_v17 }
 0x85f   : > { %v2427_v14 = vpop.f32.mrf.mxu0 }
 0x866   : > { %v2335_v18 = vpop.f32.mrf.mxu3 }
 0x867   : > { %v2339_v62 = vmul.f32 %v2785_v24, %v2335_v18 }
 0x869   : > { %2693 = vmatmul.msk.f32.gmra.mxu2 %vm1635_vm5, %v2339_v62 }
 0x86e   : > { %v2392_v22 = vpop.f32.mrf.mxu3 }
 0x875   : > { %v2363_v39 = vpop.f32.mrf.mxu2 }
 0x876   : > { %v2398_v30 = vadd.f32 %v2392_v22, %v2363_v39  ;;  %v2395_v8 = vpop.f32.mrf.mxu3 }
 0x878   : > { %v2403_v23 = vadd.f32 %v2732_v36, %v2398_v30 }
 0x87a   : > { %v2405_v9 = vmax.f32 %v2403_v23, 0.0 }
 0x87c   : > { %2698 = vmatmul.msk.f32.vlgmr.msra.gmra.mxu1 %vm1635_vm5, %v2405_v9 }
 0x8ec   : > { %v2366_v26 = vpop.f32.mrf.mxu2 }
 0x8ed   : > { %v2399_v19 = vadd.f32 %v2395_v8, %v2366_v26 }
 0x8ef   : > { %v2404_v21 = vadd.f32 %v2732_v36, %v2399_v19 }
 0x8f1   : > { %v2406_v25 = vmax.f32 %v2404_v21, 0.0 }
 0x8f3   : > { %2699 = vmatmul.msk.f32.gmra.mxu1 %vm1635_vm5, %v2406_v25 }
 0x8f9   : > { %v2453_v38 = vpop.f32.mrf.mxu1 }
 0x8fa   : > { %v2459_v60 = vadd.f32 %v2453_v38, %v2424_v46 }
 0x8fc   : > { %v2464_v56 = vadd.f32 %v2733_v7, %v2459_v60 }
 0x8fe   : > { %v2466_v12 = vmax.f32 %v2464_v56, 0.0 }
 0x900   : > { %v2468_v29 = vsel %vm1635_vm5, %v2466_v12, 0.0 }
 0x901   : > { %v2469_v10 = vrot.slane %v2468_v29, 4 }
 0x903   : > { %v2470_v42 = vadd.f32 %v2469_v10, %v2468_v29 }
 0x905   : > { %v2471_v0 = vrot.slane %v2470_v42, 2 }
 0x907   : > { %v2472_v35 = vadd.f32 %v2471_v0, %v2470_v42 }
 0x909   : > { %v2473_v34 = vrot.slane %v2472_v35, 1 }
 0x90b   : > { %v2474_v37 = vadd.f32 %v2473_v34, %v2472_v35 }
 0x90d   : > { %v2482_v1 = vmul.f32 0.125, %v2474_v37 }
 0x90f   : > { %2486 = vrot.lane.b32.xlu1 %v2482_v1, %s2800_s7 }
 0x970   : > { %v2456_v45 = vpop.f32.mrf.mxu1 }
 0x971   : > { %v2460_v16 = vadd.f32 %v2456_v45, %v2427_v14 }
 0x973   : > { %v2465_v20 = vadd.f32 %v2733_v7, %v2460_v16 }
 0x975   : > { %v2467_v5 = vmax.f32 %v2465_v20, 0.0 }
 0x977   : > { %v2475_v55 = vsel %vm1635_vm5, %v2467_v5, 0.0 }
 0x978   : > { %v2476_v57 = vrot.slane %v2475_v55, 4 }
 0x97a   : > { %v2477_v27 = vadd.f32 %v2476_v57, %v2475_v55 }
 0x97c   : > { %v2478_v24 = vrot.slane %v2477_v27, 2 }
 0x97e   : > { %v2479_v47 = vadd.f32 %v2478_v24, %v2477_v27 }
 0x980   : > { %v2480_v49 = vrot.slane %v2479_v47, 1 }
 0x981   : > { %v2487_v48 = vpop.permute.xlu1 %2486 }
 0x982   : > { %v2492_v13 = vsel %vm1635_vm5, %v1662_v51, %v2487_v48  ;;  %v2481_v3 = vadd.f32 %v2480_v49, %v2479_v47 }
 0x983   : > { %2495 = vst.msk [vmem:[%s790_s25] sm:$0x1] %vm2494_vm0, %v2492_v13 }
 0x984   : > { %v2483_v28 = vmul.f32 0.125, %v2481_v3 }
 0x986   : > { %2488 = vrot.lane.b32.xlu1 %v2483_v28, %s2800_s7 }
 0x9f8   : > { %v2489_v59 = vpop.permute.xlu1 %2488 }
 0x9f9   : > { %v2493_v52 = vsel %vm1635_vm5, %v1663_v40, %v2489_v59 }
 0x9fa   : > { %2496 = vst.msk [vmem:[%s790_s25 + $0x1] sm:$0x1] %vm2494_vm0, %v2493_v52 }
 0x9fb PF: > { %s34_s5 = sadd.s32 1, %s2796_s5  }
 0x9fc   : > { %p31_p4 = scmp.ge.s32.totalorder %s34_s5, 4  }
 0x9fe   :  { %33 = sbr.rel (!%p31_p4) target bundleno = 10 (0xa), region = 152 }

</bundles_post_ra>
